<compile_context>
chip_gen: v6e
topology: v6e:2x2x1
jax: 0.10.0
libtpu: 0.0.40
codegen_flags: <defaults>
</compile_context>

<pallas_src>
import functools
import math

import jax
import jax.numpy as jnp
from jax import lax
from jax.experimental import pallas as pl
from jax.experimental.pallas import tpu as pltpu


_NEG_BIG = -10000.0   # matches the reference masked_fill value
_LN_EPS = 1e-12       # the module defines its own LayerNorm with eps=1e-12 (not 1e-5)


def _encoder_kernel(x_ref, pmr_ref, pmc_ref, cfc_ref,
                    wqkv_ref, bqkv_ref, wo_ref, bo_ref,
                    g1_ref, be1_ref, w1_ref, b1_ref, w2_ref, b2_ref,
                    g2_ref, be2_ref,
                    out_ref,
                    x_scr,
                    *, n_head, bt, seq_len):
    """One grid step = (one batch block) x (one encoder layer)."""
    l = pl.program_id(1)
    n_layers = pl.num_programs(1)

    rows = bt * seq_len
    d_model = x_scr.shape[-1]
    d_head = d_model // n_head
    scale = 1.0 / math.sqrt(d_head)

    # Load the activation block into the resident VMEM scratch at the first layer.
    @pl.when(l == 0)
    def _():
        x_scr[...] = x_ref[...].astype(jnp.float32).reshape(rows, d_model)

    x = x_scr[...]                                   # (rows, D) f32
    xb = x.astype(jnp.bfloat16)

    # --- attention mask / coefficients (computed once, shared by all heads) ---
    pm_row = pmr_ref[0]                              # (1, rows)   key padding
    pm_col = pmc_ref[0]                              # (rows, 1)   query padding
    cf_col = cfc_ref[0]                              # (rows, 1)   key coefficients
    kill = jnp.logical_or(pm_col == 0.0, pm_row == 0.0)        # (rows, rows)
    if bt > 1:
        # Batch elements share one flattened attention block: forbid cross-batch
        # attention exactly (exp(-inf) == 0, padded rows stay uniform within batch).
        q_id = lax.broadcasted_iota(jnp.int32, (rows, rows), 0) // seq_len
        k_id = lax.broadcasted_iota(jnp.int32, (rows, rows), 1) // seq_len
        cross = q_id != k_id
        kill = jnp.logical_or(kill, cross)
        fill = jnp.where(cross, -jnp.inf, _NEG_BIG).astype(jnp.float32)
    else:
        fill = jnp.float32(_NEG_BIG)

    # --- fused QKV projection (one MXU pass) ---
    qkv = jnp.dot(xb, wqkv_ref[0], preferred_element_type=jnp.float32) + bqkv_ref[0]
    q = qkv[:, :d_model] * scale                     # fold 1/sqrt(d_head) into Q
    k = qkv[:, d_model:2 * d_model]
    v = qkv[:, 2 * d_model:] * cf_col                # fold modality coefficients into V
    qb = q.astype(jnp.bfloat16)
    kb = k.astype(jnp.bfloat16)
    vb = v.astype(jnp.bfloat16)

    heads = []
    for h in range(n_head):                          # static, small head loop
        sl = slice(h * d_head, (h + 1) * d_head)
        s = lax.dot_general(qb[:, sl], kb[:, sl],
                            (((1,), (1,)), ((), ())),
                            preferred_element_type=jnp.float32)      # (rows, rows)
        s = jnp.where(kill, fill, s)                 # single combined masked_fill
        s = s - jnp.max(s, axis=-1, keepdims=True)
        e = jnp.exp(s)
        p = e * pl.reciprocal(jnp.sum(e, axis=-1, keepdims=True), approx=True)
        heads.append(jnp.dot(p.astype(jnp.bfloat16), vb[:, sl],
                             preferred_element_type=jnp.float32))
    attn = jnp.concatenate(heads, axis=-1)           # (rows, D) f32
    attn = jnp.dot(attn.astype(jnp.bfloat16), wo_ref[0],
                   preferred_element_type=jnp.float32) + bo_ref[0]

    # --- residual + LayerNorm 1 ---
    y = attn + x
    mu = jnp.mean(y, axis=-1, keepdims=True)
    yc = y - mu
    var = jnp.mean(yc * yc, axis=-1, keepdims=True)
    y = yc * lax.rsqrt(var + _LN_EPS)
    y = y * g1_ref[0] + be1_ref[0]

    # --- position-wise feed-forward ---
    h1 = jnp.dot(y.astype(jnp.bfloat16), w1_ref[0],
                 preferred_element_type=jnp.float32) + b1_ref[0]
    h1 = jnp.maximum(h1, 0.0)
    ff = jnp.dot(h1.astype(jnp.bfloat16), w2_ref[0],
                 preferred_element_type=jnp.float32) + b2_ref[0]

    # --- residual + LayerNorm 2 ---
    z = ff + y
    mu2 = jnp.mean(z, axis=-1, keepdims=True)
    zc = z - mu2
    var2 = jnp.mean(zc * zc, axis=-1, keepdims=True)
    z = zc * lax.rsqrt(var2 + _LN_EPS)
    z = z * g2_ref[0] + be2_ref[0]

    x_scr[...] = z                                   # stays resident for next layer

    @pl.when(l == n_layers - 1)
    def _():
        out_ref[...] = z.reshape(bt, seq_len, d_model).astype(out_ref.dtype)


def _pick_block_batch(batch, seq_len):
    """Batch elements per grid step: keep >=2 'parallel' grid steps when possible
    (v7x megacore), then grow Bt*L toward 128 MXU rows; Bt must divide batch."""
    target = max(1, 128 // max(seq_len, 1))
    divisors = [d for d in range(1, batch + 1) if batch % d == 0]
    cands = [d for d in divisors if d <= target] or [1]
    if batch >= 2:
        two_step = [d for d in cands if batch // d >= 2]
        if two_step:
            cands = two_step
    return max(cands)


def _stack_params(layers_params, matmul_dtype):
    """Stack per-layer parameters along a leading layer axis; fuse Q/K/V weights."""
    def stk(name):
        return jnp.stack([p[name] for p in layers_params])
    wqkv = jnp.stack([jnp.concatenate([p["wq"], p["wk"], p["wv"]], axis=1)
                      for p in layers_params]).astype(matmul_dtype)
    bqkv = jnp.stack([jnp.concatenate([p["bq"], p["bk"], p["bv"]], axis=1)
                      for p in layers_params]).astype(jnp.float32)
    return {
        "wqkv": wqkv, "bqkv": bqkv,
        "wo": stk("wo").astype(matmul_dtype), "bo": stk("bo"),
        "g1": stk("g1"), "be1": stk("be1"),
        "w1": stk("w1").astype(matmul_dtype), "b1": stk("b1"),
        "w2": stk("w2").astype(matmul_dtype), "b2": stk("b2"),
        "g2": stk("g2"), "be2": stk("be2"),
    }


def custom_encoder(embedding, text_mask, audio_mask, layers_params, *, n_head,
                   block_batch=None, matmul_dtype=jnp.bfloat16):
    """Pure-JAX wrapper reproducing CustomEncoder.forward (all layers in one kernel)."""
    B, L, D = embedding.shape
    n_layers = len(layers_params)
    assert D % n_head == 0

    text_mask = text_mask.astype(jnp.float32)
    audio_mask = audio_mask.astype(jnp.float32)
    pm = jnp.concatenate([text_mask, audio_mask], axis=1)            # (B, L)
    text_len = jnp.sum(text_mask, axis=1)
    audio_len = jnp.sum(audio_mask, axis=1)
    total_len = text_len + audio_len
    # Reference divides by 2*len and would NaN on a fully padded modality; guard it.
    text_coef = jnp.where(text_len > 0, total_len / (2.0 * jnp.maximum(text_len, 1.0)), 0.0)
    audio_coef = jnp.where(audio_len > 0, total_len / (2.0 * jnp.maximum(audio_len, 1.0)), 0.0)
    cf = jnp.concatenate([text_mask * text_coef[:, None],
                          audio_mask * audio_coef[:, None]], axis=1)  # (B, L)

    bt = block_batch or _pick_block_batch(B, L)
    assert B % bt == 0
    num_b = B // bt
    rows = bt * L

    # Masks / coefficients pre-laid-out so the kernel needs no risky reshapes:
    pm_row = pm.reshape(num_b, 1, rows)      # key-axis padding mask
    pm_col = pm.reshape(num_b, rows, 1)      # query-axis padding mask
    cf_col = cf.reshape(num_b, rows, 1)      # per-key modality coefficients

    p = _stack_params(layers_params, matmul_dtype)
    H = p["w1"].shape[-1]

    x = embedding.astype(jnp.float32)

    def wspec(shape):
        # per-layer weight block, selected by the layer grid coordinate
        return pl.BlockSpec((1,) + shape, lambda b, l: (l, 0, 0))

    in_specs = [
        pl.BlockSpec((bt, L, D), lambda b, l: (b, 0, 0)),     # x (read only at l == 0)
        pl.BlockSpec((1, 1, rows), lambda b, l: (b, 0, 0)),   # padding mask (keys)
        pl.BlockSpec((1, rows, 1), lambda b, l: (b, 0, 0)),   # padding mask (queries)
        pl.BlockSpec((1, rows, 1), lambda b, l: (b, 0, 0)),   # modality coefficients
        wspec((D, 3 * D)), wspec((1, 3 * D)),                 # wqkv, bqkv
        wspec((D, D)), wspec((1, D)),                         # wo, bo
        wspec((1, D)), wspec((1, D)),                         # gamma1, beta1
        wspec((D, H)), wspec((1, H)),                         # w1, b1
        wspec((H, D)), wspec((1, D)),                         # w2, b2
        wspec((1, D)), wspec((1, D)),                         # gamma2, beta2
    ]

    kernel = functools.partial(_encoder_kernel, n_head=n_head, bt=bt, seq_len=L)
    return pl.pallas_call(
        kernel,
        out_shape=jax.ShapeDtypeStruct((B, L, D), jnp.float32),
        grid_spec=pltpu.PrefetchScalarGridSpec(
            num_scalar_prefetch=0,
            grid=(num_b, n_layers),                   # layer axis last, "arbitrary"
            in_specs=in_specs,
            out_specs=pl.BlockSpec((bt, L, D), lambda b, l: (b, 0, 0)),
            scratch_shapes=[pltpu.VMEM((rows, D), jnp.float32)],   # resident activation
        ),
        compiler_params=pltpu.CompilerParams(
            dimension_semantics=("parallel", "arbitrary"),
            # explicit VMEM budget: fits v7x's 64 MiB physical VMEM with headroom
            vmem_limit_bytes=32 * 1024 * 1024,
        ),
    )(x, pm_row, pm_col, cf_col,
      p["wqkv"], p["bqkv"], p["wo"], p["bo"],
      p["g1"], p["be1"], p["w1"], p["b1"], p["w2"], p["b2"],
      p["g2"], p["be2"])


def init_params(key, d_model, ffn_hidden, n_layers):
    """Deterministic synthetic parameters (nn.Linear-style uniform init), f32."""
    layers = []
    for _ in range(n_layers):
        p = {}

        def lin(k, fan_in, shape):
            bound = 1.0 / math.sqrt(fan_in)
            return jax.random.uniform(k, shape, jnp.float32, -bound, bound)

        keys = jax.random.split(key, 13)
        key = keys[0]
        p["wq"] = lin(keys[1], d_model, (d_model, d_model))
        p["bq"] = lin(keys[2], d_model, (1, d_model))
        p["wk"] = lin(keys[3], d_model, (d_model, d_model))
        p["bk"] = lin(keys[4], d_model, (1, d_model))
        p["wv"] = lin(keys[5], d_model, (d_model, d_model))
        p["bv"] = lin(keys[6], d_model, (1, d_model))
        p["wo"] = lin(keys[7], d_model, (d_model, d_model))
        p["bo"] = lin(keys[8], d_model, (1, d_model))
        p["g1"] = jnp.ones((1, d_model), jnp.float32)
        p["be1"] = jnp.zeros((1, d_model), jnp.float32)
        p["w1"] = lin(keys[9], d_model, (d_model, ffn_hidden))
        p["b1"] = lin(keys[10], d_model, (1, ffn_hidden))
        p["w2"] = lin(keys[11], ffn_hidden, (ffn_hidden, d_model))
        p["b2"] = lin(keys[12], ffn_hidden, (1, d_model))
        p["g2"] = jnp.ones((1, d_model), jnp.float32)
        p["be2"] = jnp.zeros((1, d_model), jnp.float32)
        layers.append(p)
    return layers


if __name__ == "__main__":
    B = 2
    L_TEXT, L_AUDIO = 8, 8
    D_MODEL, FFN_HIDDEN, N_HEAD, N_LAYERS = 32, 64, 4, 2

    root = jax.random.PRNGKey(0)
    k_emb, k_par = jax.random.split(root)

    embedding = jax.random.normal(k_emb, (B, L_TEXT + L_AUDIO, D_MODEL), jnp.float32)
    # masks: 1 = valid token, 0 = padding (some padding to exercise the masking path)
    text_mask = jnp.array([[1, 1, 1, 1, 1, 1, 0, 0],
                           [1, 1, 1, 1, 0, 0, 0, 0]], jnp.float32)
    audio_mask = jnp.array([[1, 1, 1, 1, 1, 0, 0, 0],
                            [1, 1, 1, 1, 1, 1, 1, 0]], jnp.float32)

    params = init_params(k_par, D_MODEL, FFN_HIDDEN, N_LAYERS)

    out = custom_encoder(embedding, text_mask, audio_mask, params, n_head=N_HEAD)
    out = jax.block_until_ready(out)
    assert out.shape == (B, L_TEXT + L_AUDIO, D_MODEL)
    assert bool(jnp.all(jnp.isfinite(out)))
    print("KERNEL_OK")
</pallas_src>

<mosaic_0001>
module attributes {stable_mosaic.version = 11 : i64} {
  func.func @_encoder_kernel(%arg0: i32, %arg1: i32, %arg2: memref<1x16x32xf32, #tpu.memory_space<vmem>>, %arg3: memref<1x1x16xf32, #tpu.memory_space<vmem>>, %arg4: memref<1x16x1xf32, #tpu.memory_space<vmem>>, %arg5: memref<1x16x1xf32, #tpu.memory_space<vmem>>, %arg6: memref<1x32x96xbf16, #tpu.memory_space<vmem>>, %arg7: memref<1x1x96xf32, #tpu.memory_space<vmem>>, %arg8: memref<1x32x32xbf16, #tpu.memory_space<vmem>>, %arg9: memref<1x1x32xf32, #tpu.memory_space<vmem>>, %arg10: memref<1x1x32xf32, #tpu.memory_space<vmem>>, %arg11: memref<1x1x32xf32, #tpu.memory_space<vmem>>, %arg12: memref<1x32x64xbf16, #tpu.memory_space<vmem>>, %arg13: memref<1x1x64xf32, #tpu.memory_space<vmem>>, %arg14: memref<1x64x32xbf16, #tpu.memory_space<vmem>>, %arg15: memref<1x1x32xf32, #tpu.memory_space<vmem>>, %arg16: memref<1x1x32xf32, #tpu.memory_space<vmem>>, %arg17: memref<1x1x32xf32, #tpu.memory_space<vmem>>, %arg18: memref<1x16x32xf32, #tpu.memory_space<vmem>>, %arg19: memref<16x32xf32, #tpu.memory_space<vmem>>) attributes {dimension_semantics = [#tpu.dimension_semantics<parallel>, #tpu.dimension_semantics<arbitrary>], iteration_bounds = array<i64: 2, 2>, scalar_prefetch = 0 : i64, scratch_operands = 1 : i64, tpu.core_type = #tpu.core_type<tc>, window_params = [{transform_indices = @transform_0, window_bounds = array<i64: 1, 16, 32>}, {transform_indices = @transform_1, window_bounds = array<i64: 1, 1, 16>}, {transform_indices = @transform_2, window_bounds = array<i64: 1, 16, 1>}, {transform_indices = @transform_3, window_bounds = array<i64: 1, 16, 1>}, {transform_indices = @transform_4, window_bounds = array<i64: 1, 32, 96>}, {transform_indices = @transform_5, window_bounds = array<i64: 1, 1, 96>}, {transform_indices = @transform_6, window_bounds = array<i64: 1, 32, 32>}, {transform_indices = @transform_7, window_bounds = array<i64: 1, 1, 32>}, {transform_indices = @transform_8, window_bounds = array<i64: 1, 1, 32>}, {transform_indices = @transform_9, window_bounds = array<i64: 1, 1, 32>}, {transform_indices = @transform_10, window_bounds = array<i64: 1, 32, 64>}, {transform_indices = @transform_11, window_bounds = array<i64: 1, 1, 64>}, {transform_indices = @transform_12, window_bounds = array<i64: 1, 64, 32>}, {transform_indices = @transform_13, window_bounds = array<i64: 1, 1, 32>}, {transform_indices = @transform_14, window_bounds = array<i64: 1, 1, 32>}, {transform_indices = @transform_15, window_bounds = array<i64: 1, 1, 32>}, {transform_indices = @transform_16, window_bounds = array<i64: 1, 16, 32>}]} {
    %c0_i32 = arith.constant 0 : i32
    %0 = arith.cmpi eq, %arg1, %c0_i32 : i32
    %1 = arith.extui %0 : i1 to i32
    %c0_i32_0 = arith.constant 0 : i32
    %2 = arith.cmpi ne, %1, %c0_i32_0 : i32
    scf.if %2 {
      %c0_87 = arith.constant 0 : index
      %c0_88 = arith.constant 0 : index
      %c0_89 = arith.constant 0 : index
      %188 = vector.load %arg2[%c0_87, %c0_88, %c0_89] : memref<1x16x32xf32, #tpu.memory_space<vmem>>, vector<1x16x32xf32>
      %189 = vector.shape_cast %188 : vector<1x16x32xf32> to vector<16x32xf32>
      %c0_90 = arith.constant 0 : index
      %c0_91 = arith.constant 0 : index
      %190 = vector.load %arg19[%c0_90, %c0_91] : memref<16x32xf32, #tpu.memory_space<vmem>>, vector<16x32xf32>
      tpu.vector_store %arg19[%c0_90, %c0_91], %189 {strides = array<i32>} : memref<16x32xf32, #tpu.memory_space<vmem>>, vector<16x32xf32>,
    } else {
    }
    %c0 = arith.constant 0 : index
    %c0_1 = arith.constant 0 : index
    %3 = vector.load %arg19[%c0, %c0_1] : memref<16x32xf32, #tpu.memory_space<vmem>>, vector<16x32xf32>
    %4 = arith.truncf %3 : vector<16x32xf32> to vector<16x32xbf16>
    %c0_2 = arith.constant 0 : index
    %c0_3 = arith.constant 0 : index
    %c0_4 = arith.constant 0 : index
    %5 = vector.load %arg3[%c0_2, %c0_3, %c0_4] : memref<1x1x16xf32, #tpu.memory_space<vmem>>, vector<1x1x16xf32>
    %6 = vector.shape_cast %5 : vector<1x1x16xf32> to vector<1x16xf32>
    %c0_5 = arith.constant 0 : index
    %c0_6 = arith.constant 0 : index
    %c0_7 = arith.constant 0 : index
    %7 = vector.load %arg4[%c0_5, %c0_6, %c0_7] : memref<1x16x1xf32, #tpu.memory_space<vmem>>, vector<1x16x1xf32>
    %8 = vector.shape_cast %7 : vector<1x16x1xf32> to vector<16x1xf32>
    %c0_8 = arith.constant 0 : index
    %c0_9 = arith.constant 0 : index
    %c0_10 = arith.constant 0 : index
    %9 = vector.load %arg5[%c0_8, %c0_9, %c0_10] : memref<1x16x1xf32, #tpu.memory_space<vmem>>, vector<1x16x1xf32>
    %10 = vector.shape_cast %9 : vector<1x16x1xf32> to vector<16x1xf32>
    %cst = arith.constant 0.000000e+00 : f32
    %11 = vector.broadcast %cst : f32 to vector<16x1xf32>
    %12 = arith.cmpf oeq, %8, %11 : vector<16x1xf32>
    %cst_11 = arith.constant 0.000000e+00 : f32
    %13 = vector.broadcast %cst_11 : f32 to vector<1x16xf32>
    %14 = arith.cmpf oeq, %6, %13 : vector<1x16xf32>
    %15 = vector.broadcast %12 : vector<16x1xi1> to vector<16x16xi1>
    %16 = vector.broadcast %14 : vector<1x16xi1> to vector<16x16xi1>
    %17 = arith.ori %15, %16 : vector<16x16xi1>
    %c0_12 = arith.constant 0 : index
    %c0_13 = arith.constant 0 : index
    %c0_14 = arith.constant 0 : index
    %18 = vector.load %arg6[%c0_12, %c0_13, %c0_14] : memref<1x32x96xbf16, #tpu.memory_space<vmem>>, vector<1x32x96xbf16>
    %19 = vector.shape_cast %18 : vector<1x32x96xbf16> to vector<32x96xbf16>
    %cst_15 = arith.constant dense<0.000000e+00> : vector<16x96xf32>
    %20 = tpu.matmul %4, %19, %cst_15 {dimension_numbers = #tpu.dot_dimension_numbers<[1], [0], [0], [1], [0, 0, 1, 1], [], []>} : vector<16x32xbf16>, vector<32x96xbf16>, vector<16x96xf32> -> vector<16x96xf32>
    %c0_16 = arith.constant 0 : index
    %c0_17 = arith.constant 0 : index
    %c0_18 = arith.constant 0 : index
    %21 = vector.load %arg7[%c0_16, %c0_17, %c0_18] : memref<1x1x96xf32, #tpu.memory_space<vmem>>, vector<1x1x96xf32>
    %22 = vector.shape_cast %21 : vector<1x1x96xf32> to vector<1x96xf32>
    %23 = vector.broadcast %22 : vector<1x96xf32> to vector<16x96xf32>
    %24 = arith.addf %20, %23 : vector<16x96xf32>
    %25 = vector.extract_strided_slice %24 {offsets = [0, 0], sizes = [16, 32], strides = [1, 1]} : vector<16x96xf32> to vector<16x32xf32>
    %cst_19 = arith.constant 0.353553385 : f32
    %26 = vector.broadcast %cst_19 : f32 to vector<16x32xf32>
    %27 = arith.mulf %25, %26 : vector<16x32xf32>
    %28 = vector.extract_strided_slice %24 {offsets = [0, 32], sizes = [16, 32], strides = [1, 1]} : vector<16x96xf32> to vector<16x32xf32>
    %29 = vector.extract_strided_slice %24 {offsets = [0, 64], sizes = [16, 32], strides = [1, 1]} : vector<16x96xf32> to vector<16x32xf32>
    %30 = vector.broadcast %10 : vector<16x1xf32> to vector<16x32xf32>
    %31 = arith.mulf %29, %30 : vector<16x32xf32>
    %32 = arith.truncf %27 : vector<16x32xf32> to vector<16x32xbf16>
    %33 = arith.truncf %28 : vector<16x32xf32> to vector<16x32xbf16>
    %34 = arith.truncf %31 : vector<16x32xf32> to vector<16x32xbf16>
    %35 = vector.extract_strided_slice %32 {offsets = [0, 0], sizes = [16, 8], strides = [1, 1]} : vector<16x32xbf16> to vector<16x8xbf16>
    %36 = vector.extract_strided_slice %33 {offsets = [0, 0], sizes = [16, 8], strides = [1, 1]} : vector<16x32xbf16> to vector<16x8xbf16>
    %cst_20 = arith.constant dense<0.000000e+00> : vector<16x16xf32>
    %37 = tpu.matmul %35, %36, %cst_20 {dimension_numbers = #tpu.dot_dimension_numbers<[1], [1], [0], [0], [0, 0, 1, 0], [], []>} : vector<16x8xbf16>, vector<16x8xbf16>, vector<16x16xf32> -> vector<16x16xf32>
    %cst_21 = arith.constant -1.000000e+04 : f32
    %38 = vector.broadcast %cst_21 : f32 to vector<16x16xf32>
    %39 = arith.select %17, %38, %37 : vector<16x16xi1>, vector<16x16xf32>
    %cst_22 = arith.constant dense<0xFF800000> : vector<16xf32>
    %40 = vector.multi_reduction <maximumf>, %39, %cst_22 [1] : vector<16x16xf32> to vector<16xf32>
    %41 = vector.shape_cast %40 : vector<16xf32> to vector<16x1xf32>
    %42 = vector.broadcast %41 : vector<16x1xf32> to vector<16x16xf32>
    %43 = arith.subf %39, %42 : vector<16x16xf32>
    %44 = math.exp %43 : vector<16x16xf32>
    %cst_23 = arith.constant dense<0.000000e+00> : vector<16xf32>
    %45 = vector.multi_reduction <add>, %44, %cst_23 [1] : vector<16x16xf32> to vector<16xf32>
    %46 = vector.shape_cast %45 : vector<16xf32> to vector<16x1xf32>
    %47 = tpu.reciprocal %46 {approx = true} : vector<16x1xf32> -> vector<16x1xf32>
    %48 = vector.broadcast %47 : vector<16x1xf32> to vector<16x16xf32>
    %49 = arith.mulf %44, %48 : vector<16x16xf32>
    %50 = arith.truncf %49 : vector<16x16xf32> to vector<16x16xbf16>
    %51 = vector.extract_strided_slice %34 {offsets = [0, 0], sizes = [16, 8], strides = [1, 1]} : vector<16x32xbf16> to vector<16x8xbf16>
    %cst_24 = arith.constant dense<0.000000e+00> : vector<16x8xf32>
    %52 = tpu.matmul %50, %51, %cst_24 {dimension_numbers = #tpu.dot_dimension_numbers<[1], [0], [0], [1], [0, 0, 1, 1], [], []>} : vector<16x16xbf16>, vector<16x8xbf16>, vector<16x8xf32> -> vector<16x8xf32>
    %53 = vector.extract_strided_slice %32 {offsets = [0, 8], sizes = [16, 8], strides = [1, 1]} : vector<16x32xbf16> to vector<16x8xbf16>
    %54 = vector.extract_strided_slice %33 {offsets = [0, 8], sizes = [16, 8], strides = [1, 1]} : vector<16x32xbf16> to vector<16x8xbf16>
    %cst_25 = arith.constant dense<0.000000e+00> : vector<16x16xf32>
    %55 = tpu.matmul %53, %54, %cst_25 {dimension_numbers = #tpu.dot_dimension_numbers<[1], [1], [0], [0], [0, 0, 1, 0], [], []>} : vector<16x8xbf16>, vector<16x8xbf16>, vector<16x16xf32> -> vector<16x16xf32>
    %cst_26 = arith.constant -1.000000e+04 : f32
    %56 = vector.broadcast %cst_26 : f32 to vector<16x16xf32>
    %57 = arith.select %17, %56, %55 : vector<16x16xi1>, vector<16x16xf32>
    %cst_27 = arith.constant dense<0xFF800000> : vector<16xf32>
    %58 = vector.multi_reduction <maximumf>, %57, %cst_27 [1] : vector<16x16xf32> to vector<16xf32>
    %59 = vector.shape_cast %58 : vector<16xf32> to vector<16x1xf32>
    %60 = vector.broadcast %59 : vector<16x1xf32> to vector<16x16xf32>
    %61 = arith.subf %57, %60 : vector<16x16xf32>
    %62 = math.exp %61 : vector<16x16xf32>
    %cst_28 = arith.constant dense<0.000000e+00> : vector<16xf32>
    %63 = vector.multi_reduction <add>, %62, %cst_28 [1] : vector<16x16xf32> to vector<16xf32>
    %64 = vector.shape_cast %63 : vector<16xf32> to vector<16x1xf32>
    %65 = tpu.reciprocal %64 {approx = true} : vector<16x1xf32> -> vector<16x1xf32>
    %66 = vector.broadcast %65 : vector<16x1xf32> to vector<16x16xf32>
    %67 = arith.mulf %62, %66 : vector<16x16xf32>
    %68 = arith.truncf %67 : vector<16x16xf32> to vector<16x16xbf16>
    %69 = vector.extract_strided_slice %34 {offsets = [0, 8], sizes = [16, 8], strides = [1, 1]} : vector<16x32xbf16> to vector<16x8xbf16>
    %cst_29 = arith.constant dense<0.000000e+00> : vector<16x8xf32>
    %70 = tpu.matmul %68, %69, %cst_29 {dimension_numbers = #tpu.dot_dimension_numbers<[1], [0], [0], [1], [0, 0, 1, 1], [], []>} : vector<16x16xbf16>, vector<16x8xbf16>, vector<16x8xf32> -> vector<16x8xf32>
    %71 = vector.extract_strided_slice %32 {offsets = [0, 16], sizes = [16, 8], strides = [1, 1]} : vector<16x32xbf16> to vector<16x8xbf16>
    %72 = vector.extract_strided_slice %33 {offsets = [0, 16], sizes = [16, 8], strides = [1, 1]} : vector<16x32xbf16> to vector<16x8xbf16>
    %cst_30 = arith.constant dense<0.000000e+00> : vector<16x16xf32>
    %73 = tpu.matmul %71, %72, %cst_30 {dimension_numbers = #tpu.dot_dimension_numbers<[1], [1], [0], [0], [0, 0, 1, 0], [], []>} : vector<16x8xbf16>, vector<16x8xbf16>, vector<16x16xf32> -> vector<16x16xf32>
    %cst_31 = arith.constant -1.000000e+04 : f32
    %74 = vector.broadcast %cst_31 : f32 to vector<16x16xf32>
    %75 = arith.select %17, %74, %73 : vector<16x16xi1>, vector<16x16xf32>
    %cst_32 = arith.constant dense<0xFF800000> : vector<16xf32>
    %76 = vector.multi_reduction <maximumf>, %75, %cst_32 [1] : vector<16x16xf32> to vector<16xf32>
    %77 = vector.shape_cast %76 : vector<16xf32> to vector<16x1xf32>
    %78 = vector.broadcast %77 : vector<16x1xf32> to vector<16x16xf32>
    %79 = arith.subf %75, %78 : vector<16x16xf32>
    %80 = math.exp %79 : vector<16x16xf32>
    %cst_33 = arith.constant dense<0.000000e+00> : vector<16xf32>
    %81 = vector.multi_reduction <add>, %80, %cst_33 [1] : vector<16x16xf32> to vector<16xf32>
    %82 = vector.shape_cast %81 : vector<16xf32> to vector<16x1xf32>
    %83 = tpu.reciprocal %82 {approx = true} : vector<16x1xf32> -> vector<16x1xf32>
    %84 = vector.broadcast %83 : vector<16x1xf32> to vector<16x16xf32>
    %85 = arith.mulf %80, %84 : vector<16x16xf32>
    %86 = arith.truncf %85 : vector<16x16xf32> to vector<16x16xbf16>
    %87 = vector.extract_strided_slice %34 {offsets = [0, 16], sizes = [16, 8], strides = [1, 1]} : vector<16x32xbf16> to vector<16x8xbf16>
    %cst_34 = arith.constant dense<0.000000e+00> : vector<16x8xf32>
    %88 = tpu.matmul %86, %87, %cst_34 {dimension_numbers = #tpu.dot_dimension_numbers<[1], [0], [0], [1], [0, 0, 1, 1], [], []>} : vector<16x16xbf16>, vector<16x8xbf16>, vector<16x8xf32> -> vector<16x8xf32>
    %89 = vector.extract_strided_slice %32 {offsets = [0, 24], sizes = [16, 8], strides = [1, 1]} : vector<16x32xbf16> to vector<16x8xbf16>
    %90 = vector.extract_strided_slice %33 {offsets = [0, 24], sizes = [16, 8], strides = [1, 1]} : vector<16x32xbf16> to vector<16x8xbf16>
    %cst_35 = arith.constant dense<0.000000e+00> : vector<16x16xf32>
    %91 = tpu.matmul %89, %90, %cst_35 {dimension_numbers = #tpu.dot_dimension_numbers<[1], [1], [0], [0], [0, 0, 1, 0], [], []>} : vector<16x8xbf16>, vector<16x8xbf16>, vector<16x16xf32> -> vector<16x16xf32>
    %cst_36 = arith.constant -1.000000e+04 : f32
    %92 = vector.broadcast %cst_36 : f32 to vector<16x16xf32>
    %93 = arith.select %17, %92, %91 : vector<16x16xi1>, vector<16x16xf32>
    %cst_37 = arith.constant dense<0xFF800000> : vector<16xf32>
    %94 = vector.multi_reduction <maximumf>, %93, %cst_37 [1] : vector<16x16xf32> to vector<16xf32>
    %95 = vector.shape_cast %94 : vector<16xf32> to vector<16x1xf32>
    %96 = vector.broadcast %95 : vector<16x1xf32> to vector<16x16xf32>
    %97 = arith.subf %93, %96 : vector<16x16xf32>
    %98 = math.exp %97 : vector<16x16xf32>
    %cst_38 = arith.constant dense<0.000000e+00> : vector<16xf32>
    %99 = vector.multi_reduction <add>, %98, %cst_38 [1] : vector<16x16xf32> to vector<16xf32>
    %100 = vector.shape_cast %99 : vector<16xf32> to vector<16x1xf32>
    %101 = tpu.reciprocal %100 {approx = true} : vector<16x1xf32> -> vector<16x1xf32>
    %102 = vector.broadcast %101 : vector<16x1xf32> to vector<16x16xf32>
    %103 = arith.mulf %98, %102 : vector<16x16xf32>
    %104 = arith.truncf %103 : vector<16x16xf32> to vector<16x16xbf16>
    %105 = vector.extract_strided_slice %34 {offsets = [0, 24], sizes = [16, 8], strides = [1, 1]} : vector<16x32xbf16> to vector<16x8xbf16>
    %cst_39 = arith.constant dense<0.000000e+00> : vector<16x8xf32>
    %106 = tpu.matmul %104, %105, %cst_39 {dimension_numbers = #tpu.dot_dimension_numbers<[1], [0], [0], [1], [0, 0, 1, 1], [], []>} : vector<16x16xbf16>, vector<16x8xbf16>, vector<16x8xf32> -> vector<16x8xf32>
    %107 = tpu.concatenate %52, %70, %88, %106 in 1 : vector<16x8xf32>, vector<16x8xf32>, vector<16x8xf32>, vector<16x8xf32> -> vector<16x32xf32>
    %108 = arith.truncf %107 : vector<16x32xf32> to vector<16x32xbf16>
    %c0_40 = arith.constant 0 : index
    %c0_41 = arith.constant 0 : index
    %c0_42 = arith.constant 0 : index
    %109 = vector.load %arg8[%c0_40, %c0_41, %c0_42] : memref<1x32x32xbf16, #tpu.memory_space<vmem>>, vector<1x32x32xbf16>
    %110 = vector.shape_cast %109 : vector<1x32x32xbf16> to vector<32x32xbf16>
    %cst_43 = arith.constant dense<0.000000e+00> : vector<16x32xf32>
    %111 = tpu.matmul %108, %110, %cst_43 {dimension_numbers = #tpu.dot_dimension_numbers<[1], [0], [0], [1], [0, 0, 1, 1], [], []>} : vector<16x32xbf16>, vector<32x32xbf16>, vector<16x32xf32> -> vector<16x32xf32>
    %c0_44 = arith.constant 0 : index
    %c0_45 = arith.constant 0 : index
    %c0_46 = arith.constant 0 : index
    %112 = vector.load %arg9[%c0_44, %c0_45, %c0_46] : memref<1x1x32xf32, #tpu.memory_space<vmem>>, vector<1x1x32xf32>
    %113 = vector.shape_cast %112 : vector<1x1x32xf32> to vector<1x32xf32>
    %114 = vector.broadcast %113 : vector<1x32xf32> to vector<16x32xf32>
    %115 = arith.addf %111, %114 : vector<16x32xf32>
    %116 = arith.addf %115, %3 : vector<16x32xf32>
    %cst_47 = arith.constant dense<0.000000e+00> : vector<16xf32>
    %117 = vector.multi_reduction <add>, %116, %cst_47 [1] : vector<16x32xf32> to vector<16xf32>
    %118 = vector.shape_cast %117 : vector<16xf32> to vector<16x1xf32>
    %cst_48 = arith.constant 3.200000e+01 : f32
    %119 = vector.broadcast %cst_48 : f32 to vector<16x1xf32>
    %120 = arith.divf %118, %119 : vector<16x1xf32>
    %121 = vector.broadcast %120 : vector<16x1xf32> to vector<16x32xf32>
    %122 = arith.subf %116, %121 : vector<16x32xf32>
    %123 = arith.mulf %122, %122 : vector<16x32xf32>
    %cst_49 = arith.constant dense<0.000000e+00> : vector<16xf32>
    %124 = vector.multi_reduction <add>, %123, %cst_49 [1] : vector<16x32xf32> to vector<16xf32>
    %125 = vector.shape_cast %124 : vector<16xf32> to vector<16x1xf32>
    %cst_50 = arith.constant 3.200000e+01 : f32
    %126 = vector.broadcast %cst_50 : f32 to vector<16x1xf32>
    %127 = arith.divf %125, %126 : vector<16x1xf32>
    %cst_51 = arith.constant 9.99999996E-13 : f32
    %128 = vector.broadcast %cst_51 : f32 to vector<16x1xf32>
    %129 = arith.addf %127, %128 : vector<16x1xf32>
    %130 = math.rsqrt %129 : vector<16x1xf32>
    %131 = vector.broadcast %130 : vector<16x1xf32> to vector<16x32xf32>
    %132 = arith.mulf %122, %131 : vector<16x32xf32>
    %c0_52 = arith.constant 0 : index
    %c0_53 = arith.constant 0 : index
    %c0_54 = arith.constant 0 : index
    %133 = vector.load %arg10[%c0_52, %c0_53, %c0_54] : memref<1x1x32xf32, #tpu.memory_space<vmem>>, vector<1x1x32xf32>
    %134 = vector.shape_cast %133 : vector<1x1x32xf32> to vector<1x32xf32>
    %135 = vector.broadcast %134 : vector<1x32xf32> to vector<16x32xf32>
    %136 = arith.mulf %132, %135 : vector<16x32xf32>
    %c0_55 = arith.constant 0 : index
    %c0_56 = arith.constant 0 : index
    %c0_57 = arith.constant 0 : index
    %137 = vector.load %arg11[%c0_55, %c0_56, %c0_57] : memref<1x1x32xf32, #tpu.memory_space<vmem>>, vector<1x1x32xf32>
    %138 = vector.shape_cast %137 : vector<1x1x32xf32> to vector<1x32xf32>
    %139 = vector.broadcast %138 : vector<1x32xf32> to vector<16x32xf32>
    %140 = arith.addf %136, %139 : vector<16x32xf32>
    %141 = arith.truncf %140 : vector<16x32xf32> to vector<16x32xbf16>
    %c0_58 = arith.constant 0 : index
    %c0_59 = arith.constant 0 : index
    %c0_60 = arith.constant 0 : index
    %142 = vector.load %arg12[%c0_58, %c0_59, %c0_60] : memref<1x32x64xbf16, #tpu.memory_space<vmem>>, vector<1x32x64xbf16>
    %143 = vector.shape_cast %142 : vector<1x32x64xbf16> to vector<32x64xbf16>
    %cst_61 = arith.constant dense<0.000000e+00> : vector<16x64xf32>
    %144 = tpu.matmul %141, %143, %cst_61 {dimension_numbers = #tpu.dot_dimension_numbers<[1], [0], [0], [1], [0, 0, 1, 1], [], []>} : vector<16x32xbf16>, vector<32x64xbf16>, vector<16x64xf32> -> vector<16x64xf32>
    %c0_62 = arith.constant 0 : index
    %c0_63 = arith.constant 0 : index
    %c0_64 = arith.constant 0 : index
    %145 = vector.load %arg13[%c0_62, %c0_63, %c0_64] : memref<1x1x64xf32, #tpu.memory_space<vmem>>, vector<1x1x64xf32>
    %146 = vector.shape_cast %145 : vector<1x1x64xf32> to vector<1x64xf32>
    %147 = vector.broadcast %146 : vector<1x64xf32> to vector<16x64xf32>
    %148 = arith.addf %144, %147 : vector<16x64xf32>
    %cst_65 = arith.constant 0.000000e+00 : f32
    %149 = vector.broadcast %cst_65 : f32 to vector<16x64xf32>
    %150 = arith.maximumf %148, %149 : vector<16x64xf32>
    %151 = arith.truncf %150 : vector<16x64xf32> to vector<16x64xbf16>
    %c0_66 = arith.constant 0 : index
    %c0_67 = arith.constant 0 : index
    %c0_68 = arith.constant 0 : index
    %152 = vector.load %arg14[%c0_66, %c0_67, %c0_68] : memref<1x64x32xbf16, #tpu.memory_space<vmem>>, vector<1x64x32xbf16>
    %153 = vector.shape_cast %152 : vector<1x64x32xbf16> to vector<64x32xbf16>
    %cst_69 = arith.constant dense<0.000000e+00> : vector<16x32xf32>
    %154 = tpu.matmul %151, %153, %cst_69 {dimension_numbers = #tpu.dot_dimension_numbers<[1], [0], [0], [1], [0, 0, 1, 1], [], []>} : vector<16x64xbf16>, vector<64x32xbf16>, vector<16x32xf32> -> vector<16x32xf32>
    %c0_70 = arith.constant 0 : index
    %c0_71 = arith.constant 0 : index
    %c0_72 = arith.constant 0 : index
    %155 = vector.load %arg15[%c0_70, %c0_71, %c0_72] : memref<1x1x32xf32, #tpu.memory_space<vmem>>, vector<1x1x32xf32>
    %156 = vector.shape_cast %155 : vector<1x1x32xf32> to vector<1x32xf32>
    %157 = vector.broadcast %156 : vector<1x32xf32> to vector<16x32xf32>
    %158 = arith.addf %154, %157 : vector<16x32xf32>
    %159 = arith.addf %158, %140 : vector<16x32xf32>
    %cst_73 = arith.constant dense<0.000000e+00> : vector<16xf32>
    %160 = vector.multi_reduction <add>, %159, %cst_73 [1] : vector<16x32xf32> to vector<16xf32>
    %161 = vector.shape_cast %160 : vector<16xf32> to vector<16x1xf32>
    %cst_74 = arith.constant 3.200000e+01 : f32
    %162 = vector.broadcast %cst_74 : f32 to vector<16x1xf32>
    %163 = arith.divf %161, %162 : vector<16x1xf32>
    %164 = vector.broadcast %163 : vector<16x1xf32> to vector<16x32xf32>
    %165 = arith.subf %159, %164 : vector<16x32xf32>
    %166 = arith.mulf %165, %165 : vector<16x32xf32>
    %cst_75 = arith.constant dense<0.000000e+00> : vector<16xf32>
    %167 = vector.multi_reduction <add>, %166, %cst_75 [1] : vector<16x32xf32> to vector<16xf32>
    %168 = vector.shape_cast %167 : vector<16xf32> to vector<16x1xf32>
    %cst_76 = arith.constant 3.200000e+01 : f32
    %169 = vector.broadcast %cst_76 : f32 to vector<16x1xf32>
    %170 = arith.divf %168, %169 : vector<16x1xf32>
    %cst_77 = arith.constant 9.99999996E-13 : f32
    %171 = vector.broadcast %cst_77 : f32 to vector<16x1xf32>
    %172 = arith.addf %170, %171 : vector<16x1xf32>
    %173 = math.rsqrt %172 : vector<16x1xf32>
    %174 = vector.broadcast %173 : vector<16x1xf32> to vector<16x32xf32>
    %175 = arith.mulf %165, %174 : vector<16x32xf32>
    %c0_78 = arith.constant 0 : index
    %c0_79 = arith.constant 0 : index
    %c0_80 = arith.constant 0 : index
    %176 = vector.load %arg16[%c0_78, %c0_79, %c0_80] : memref<1x1x32xf32, #tpu.memory_space<vmem>>, vector<1x1x32xf32>
    %177 = vector.shape_cast %176 : vector<1x1x32xf32> to vector<1x32xf32>
    %178 = vector.broadcast %177 : vector<1x32xf32> to vector<16x32xf32>
    %179 = arith.mulf %175, %178 : vector<16x32xf32>
    %c0_81 = arith.constant 0 : index
    %c0_82 = arith.constant 0 : index
    %c0_83 = arith.constant 0 : index
    %180 = vector.load %arg17[%c0_81, %c0_82, %c0_83] : memref<1x1x32xf32, #tpu.memory_space<vmem>>, vector<1x1x32xf32>
    %181 = vector.shape_cast %180 : vector<1x1x32xf32> to vector<1x32xf32>
    %182 = vector.broadcast %181 : vector<1x32xf32> to vector<16x32xf32>
    %183 = arith.addf %179, %182 : vector<16x32xf32>
    %c0_84 = arith.constant 0 : index
    %c0_85 = arith.constant 0 : index
    %184 = vector.load %arg19[%c0_84, %c0_85] : memref<16x32xf32, #tpu.memory_space<vmem>>, vector<16x32xf32>
    tpu.vector_store %arg19[%c0_84, %c0_85], %183 {strides = array<i32>} : memref<16x32xf32, #tpu.memory_space<vmem>>, vector<16x32xf32>,
    %c1_i32 = arith.constant 1 : i32
    %185 = arith.cmpi eq, %arg1, %c1_i32 : i32
    %186 = arith.extui %185 : i1 to i32
    %c0_i32_86 = arith.constant 0 : i32
    %187 = arith.cmpi ne, %186, %c0_i32_86 : i32
    scf.if %187 {
      %188 = vector.shape_cast %183 : vector<16x32xf32> to vector<1x16x32xf32>
      %c0_87 = arith.constant 0 : index
      %c0_88 = arith.constant 0 : index
      %c0_89 = arith.constant 0 : index
      %189 = vector.load %arg18[%c0_87, %c0_88, %c0_89] : memref<1x16x32xf32, #tpu.memory_space<vmem>>, vector<1x16x32xf32>
      tpu.vector_store %arg18[%c0_87, %c0_88, %c0_89], %188 {strides = array<i32>} : memref<1x16x32xf32, #tpu.memory_space<vmem>>, vector<1x16x32xf32>,
    } else {
    }
    return
  }
  func.func @transform_0(%arg0: i32, %arg1: i32) -> (i32, i32, i32) {
    %c0_i32 = arith.constant 0 : i32
    %c0_i32_0 = arith.constant 0 : i32
    %c0_i32_1 = arith.constant 0 : i32
    return %arg0, %c0_i32, %c0_i32_0 : i32, i32, i32
  }
  func.func @transform_1(%arg0: i32, %arg1: i32) -> (i32, i32, i32) {
    %c0_i32 = arith.constant 0 : i32
    %c0_i32_0 = arith.constant 0 : i32
    %c0_i32_1 = arith.constant 0 : i32
    return %arg0, %c0_i32, %c0_i32_0 : i32, i32, i32
  }
  func.func @transform_2(%arg0: i32, %arg1: i32) -> (i32, i32, i32) {
    %c0_i32 = arith.constant 0 : i32
    %c0_i32_0 = arith.constant 0 : i32
    %c0_i32_1 = arith.constant 0 : i32
    return %arg0, %c0_i32, %c0_i32_0 : i32, i32, i32
  }
  func.func @transform_3(%arg0: i32, %arg1: i32) -> (i32, i32, i32) {
    %c0_i32 = arith.constant 0 : i32
    %c0_i32_0 = arith.constant 0 : i32
    %c0_i32_1 = arith.constant 0 : i32
    return %arg0, %c0_i32, %c0_i32_0 : i32, i32, i32
  }
  func.func @transform_4(%arg0: i32, %arg1: i32) -> (i32, i32, i32) {
    %c0_i32 = arith.constant 0 : i32
    %c0_i32_0 = arith.constant 0 : i32
    %c0_i32_1 = arith.constant 0 : i32
    return %arg1, %c0_i32, %c0_i32_0 : i32, i32, i32
  }
  func.func @transform_5(%arg0: i32, %arg1: i32) -> (i32, i32, i32) {
    %c0_i32 = arith.constant 0 : i32
    %c0_i32_0 = arith.constant 0 : i32
    %c0_i32_1 = arith.constant 0 : i32
    return %arg1, %c0_i32, %c0_i32_0 : i32, i32, i32
  }
  func.func @transform_6(%arg0: i32, %arg1: i32) -> (i32, i32, i32) {
    %c0_i32 = arith.constant 0 : i32
    %c0_i32_0 = arith.constant 0 : i32
    %c0_i32_1 = arith.constant 0 : i32
    return %arg1, %c0_i32, %c0_i32_0 : i32, i32, i32
  }
  func.func @transform_7(%arg0: i32, %arg1: i32) -> (i32, i32, i32) {
    %c0_i32 = arith.constant 0 : i32
    %c0_i32_0 = arith.constant 0 : i32
    %c0_i32_1 = arith.constant 0 : i32
    return %arg1, %c0_i32, %c0_i32_0 : i32, i32, i32
  }
  func.func @transform_8(%arg0: i32, %arg1: i32) -> (i32, i32, i32) {
    %c0_i32 = arith.constant 0 : i32
    %c0_i32_0 = arith.constant 0 : i32
    %c0_i32_1 = arith.constant 0 : i32
    return %arg1, %c0_i32, %c0_i32_0 : i32, i32, i32
  }
  func.func @transform_9(%arg0: i32, %arg1: i32) -> (i32, i32, i32) {
    %c0_i32 = arith.constant 0 : i32
    %c0_i32_0 = arith.constant 0 : i32
    %c0_i32_1 = arith.constant 0 : i32
    return %arg1, %c0_i32, %c0_i32_0 : i32, i32, i32
  }
  func.func @transform_10(%arg0: i32, %arg1: i32) -> (i32, i32, i32) {
    %c0_i32 = arith.constant 0 : i32
    %c0_i32_0 = arith.constant 0 : i32
    %c0_i32_1 = arith.constant 0 : i32
    return %arg1, %c0_i32, %c0_i32_0 : i32, i32, i32
  }
  func.func @transform_11(%arg0: i32, %arg1: i32) -> (i32, i32, i32) {
    %c0_i32 = arith.constant 0 : i32
    %c0_i32_0 = arith.constant 0 : i32
    %c0_i32_1 = arith.constant 0 : i32
    return %arg1, %c0_i32, %c0_i32_0 : i32, i32, i32
  }
  func.func @transform_12(%arg0: i32, %arg1: i32) -> (i32, i32, i32) {
    %c0_i32 = arith.constant 0 : i32
    %c0_i32_0 = arith.constant 0 : i32
    %c0_i32_1 = arith.constant 0 : i32
    return %arg1, %c0_i32, %c0_i32_0 : i32, i32, i32
  }
  func.func @transform_13(%arg0: i32, %arg1: i32) -> (i32, i32, i32) {
    %c0_i32 = arith.constant 0 : i32
    %c0_i32_0 = arith.constant 0 : i32
    %c0_i32_1 = arith.constant 0 : i32
    return %arg1, %c0_i32, %c0_i32_0 : i32, i32, i32
  }
  func.func @transform_14(%arg0: i32, %arg1: i32) -> (i32, i32, i32) {
    %c0_i32 = arith.constant 0 : i32
    %c0_i32_0 = arith.constant 0 : i32
    %c0_i32_1 = arith.constant 0 : i32
    return %arg1, %c0_i32, %c0_i32_0 : i32, i32, i32
  }
  func.func @transform_15(%arg0: i32, %arg1: i32) -> (i32, i32, i32) {
    %c0_i32 = arith.constant 0 : i32
    %c0_i32_0 = arith.constant 0 : i32
    %c0_i32_1 = arith.constant 0 : i32
    return %arg1, %c0_i32, %c0_i32_0 : i32, i32, i32
  }
  func.func @transform_16(%arg0: i32, %arg1: i32) -> (i32, i32, i32) {
    %c0_i32 = arith.constant 0 : i32
    %c0_i32_0 = arith.constant 0 : i32
    %c0_i32_1 = arith.constant 0 : i32
    return %arg0, %c0_i32, %c0_i32_0 : i32, i32, i32
  }
}

</mosaic_0001>

<bundles_post_ra>
// kernel: tpu_custom_call.1
= control target key start
LH: loop header
LB: loop body
LE: loop exit
PB: predicated region body
PF: predicated region fallthrough
CT: control target
= control target key end

     0   :  { %s2961_s0 = inlined_call_operand.vmem [shape: f32[2,16,32], index: 0, kind: input, shape index: {}]   ;;  %s2962_s1 = inlined_call_operand.vmem [shape: f32[2,1,16], index: 1, kind: input, shape index: {}]   ;;  %s2963_s2 = inlined_call_operand.vmem [shape: f32[2,16,1], index: 2, kind: input, shape index: {}]   ;;  %s2964_s3 = inlined_call_operand.vmem [shape: f32[2,16,1], index: 3, kind: input, shape index: {}]   ;;  %s2965_s4 = inlined_call_operand.vmem [shape: bf16[2,32,96], index: 4, kind: input, shape index: {}]   ;;  %s2966_s5 = inlined_call_operand.vmem [shape: f32[2,1,96], index: 5, kind: input, shape index: {}]   ;;  %s2967_s6 = inlined_call_operand.vmem [shape: bf16[2,32,32], index: 6, kind: input, shape index: {}]   ;;  %s2968_s7 = inlined_call_operand.vmem [shape: f32[2,1,32], index: 7, kind: input, shape index: {}]   ;;  %s2969_s8 = inlined_call_operand.vmem [shape: f32[2,1,32], index: 8, kind: input, shape index: {}]   ;;  %s2970_s9 = inlined_call_operand.vmem [shape: f32[2,1,32], index: 9, kind: input, shape index: {}]   ;;  %s2971_s10 = inlined_call_operand.vmem [shape: bf16[2,32,64], index: 10, kind: input, shape index: {}]   ;;  %s2972_s11 = inlined_call_operand.vmem [shape: f32[2,1,64], index: 11, kind: input, shape index: {}]   ;;  %s2973_s12 = inlined_call_operand.vmem [shape: bf16[2,64,32], index: 12, kind: input, shape index: {}]   ;;  %s2974_s13 = inlined_call_operand.vmem [shape: f32[2,1,32], index: 13, kind: input, shape index: {}]   ;;  %s2975_s14 = inlined_call_operand.vmem [shape: f32[2,1,32], index: 14, kind: input, shape index: {}]   ;;  %s2976_s15 = inlined_call_operand.vmem [shape: f32[2,1,32], index: 15, kind: input, shape index: {}]   ;;  %s2977_s16 = inlined_call_operand.hbm [shape: f32[2,16,32], index: 16, kind: output, shape index: {}]  }
   0x1   :  { %2994 = sst [smem:[#allocation20_spill]] %s2961_s0 }
   0x2   :  { %2995 = sst [smem:[#allocation21_spill]] %s2962_s1 }
   0x3   :  { %2996 = sst [smem:[#allocation22_spill]] %s2963_s2 }
   0x4   :  { %2997 = sst [smem:[#allocation23_spill]] %s2964_s3 }
   0x5   :  { %2998 = sst [smem:[#allocation24_spill]] %s2965_s4 }
   0x6   :  { %2999 = sst [smem:[#allocation25_spill]] %s2967_s6 }
   0x7   :  { %3000 = sst [smem:[#allocation26_spill]] %s2969_s8 }
   0x8   :  { %3001 = sst [smem:[#allocation27_spill]] %s2970_s9 }
   0x9   :  { %3002 = sst [smem:[#allocation28_spill]] %s2971_s10 }
   0xa   :  { %3003 = sst [smem:[#allocation29_spill]] %s2973_s12 }
   0xb   :  { %3004 = sst [smem:[#allocation30_spill]] %s2975_s14 }
   0xc   :  { %3005 = sst [smem:[#allocation31_spill]] %s2976_s15 }
   0xd   :  { %3006 = sst [smem:[#allocation32_spill]] %s2977_s16 }
   0xe   :  { %21 = vsyncpa [#allocation4], 0 }
   0xf   :  { %23 = vsyncpa [#allocation4 + $0x1], 0  ;;  %s2525_s21 = smov 0   ;;  %s2527_s22 = smov 0  }
  0x10   :  { %s2529_s23 = smov 0   ;;  %s2531_s24 = smov 0  }
  0x11   :  { %s2533_s25 = smov 0   ;;  %s2535_s26 = smov 0  }
  0x12   :  { %s2537_s27 = smov 0   ;;  %s2539_s28 = smov 0  }
  0x13 LB: > { %3007 = sst [smem:[#allocation6_spill]] %s2391_s21  ;;  %s1992_s29 = sadd.s32 4294967295, %s2419_s28   ;;  %s2419_s28 = sphi %s2539_s28, %s29_s28   ;;  %s2415_s27 = sphi %s2537_s27, %s3067_s27   ;;  %s2411_s26 = sphi %s2535_s26, %s3066_s26   ;;  %s2407_s25 = sphi %s2533_s25, %s3065_s25   ;;  %s2403_s24 = sphi %s2531_s24, %s3064_s24   ;;  %s2399_s23 = sphi %s2529_s23, %s3063_s23   ;;  %s2395_s22 = sphi %s2527_s22, %s3062_s22   ;;  %s2391_s21 = sphi %s2525_s21, %s3061_s21  }
  0x14   : > { %3008 = sst [smem:[#allocation7_spill]] %s2395_s22  ;;  %s1993_s30 = sadd.s32 4294967294, %s2419_s28  }
  0x15   : > { %3009 = sst [smem:[#allocation8_spill]] %s2399_s23  ;;  %s38_s0 = sadd.s32 1, %s2411_s26 }
  0x16   : > { %3010 = sst [smem:[#allocation9_spill]] %s2403_s24  ;;  %p39_p0 = scmp.ge.s32.totalorder %s38_s0, 2 }
  0x17   : > { %3011 = sst [smem:[#allocation10_spill]] %s2407_s25  ;;  %s41_s17 = sadd.s32 1, %s2415_s27 }
  0x18   : > { %3012 = sst [smem:[#allocation11_spill]] %s2411_s26  ;;  %p474_p1 = scmp.ne.s32.totalorder %s2399_s23, %s2395_s22 }
  0x19   : > { %3013 = sst [smem:[#allocation12_spill]] %s2415_s27  ;;  %p475_p2 = scmp.eq.s32.totalorder %s1992_s29, 3 }
  0x1a   : > { %3014 = sst [smem:[#allocation13_spill]] %s2419_s28  ;;  %s3069_s0 = smov (%p39_p0, %s38_s0), 0 }
  0x1b   : > { %3015 = sst [smem:[#allocation14_spill]] %s3069_s0  ;;  %s3071_s17 = smov (!%p39_p0, %s41_s17), %s2415_s27 }
  0x1c   : > { %p2574_p3 = por %p475_p2, %p474_p1  ;;  %p480_p4 = scmp.ne.s32.totalorder %s2395_s22, %s2391_s21 }
  0x1d   : > { %p43_p5 = scmp.ge.s32.totalorder %s3071_s17, 2  ;;  %p481_p6 = scmp.eq.s32.totalorder %s1993_s30, 3 }
  0x1e   : > { %s3016_s18 = scalar_select %p2574_p3, 1, 0 }
  0x1f   : > { %p1996_p7 = scmp.ge.s32.totalorder %s2419_s28, 1  ;;  %p609_p8 = scmp.lt.s32.totalorder %s2419_s28, 5 }
  0x20   : > { %3017 = sst [smem:[#allocation15_spill]] %s3016_s18  ;;  %s3073_s17 = smov (%p43_p5, %s3071_s17), 0 }
  0x21   : > { %3018 = sst [smem:[#allocation16_spill]] %s3073_s17  ;;  %p2584_p9 = por %p481_p6, %p480_p4 }
  0x22   : > { %p610_p10 = pnand %p1996_p7, %p609_p8  ;;  %s461_s20 = ssub.s32 %s2415_s27, %s3073_s17 }
  0x23   : > { %s3019_s19 = scalar_select %p2584_p9, 1, 0 }
  0x24   : > { %s464_s29 = sadd.s32 1, %s2399_s23  ;;  %p462_p11 = scmp.eq.s32.totalorder %s461_s20, 0 }
  0x25   : > { %3020 = sst [smem:[#allocation17_spill]] %s3019_s19  ;;  %613 = sbr.rel (%p610_p10) target bundleno = 2560 (0xa00), region = 84 }
  0x26   : > { %s2592_s0 = scalar_select %p462_p11, %s2399_s23, %s464_s29  }
  0x28   : > { %3021 = sst [smem:[#allocation18_spill]] %s2592_s0 }
  0x2a   : > { %s2982_s30 = sand.u32 1, %s2395_s22   ;;  %p716_p12 = scmp.lt.s32.totalorder %s2407_s25, 1 }
  0x2b   : > { %s1997_s26 = sshll.u32 %s2982_s30, 4  ;;  %p734_p13 = scmp.lt.s32.totalorder %s2403_s24, 1 }
  0x2c   : > { %s2600_s21 = scalar_select %p716_p12, %s2407_s25, 1 }
  0x2d   : > { %s2603_s17 = scalar_select %p734_p13, %s2403_s24, 1 }
  0x2e   : > { %s2049_s20 = sshll.u32 %s2600_s21, 4  ;;  %s3023_s19 = sld [smem:[#allocation20_spill]] }
  0x2f   : > { %s3024_s2 = sld [smem:[#allocation22_spill]]  ;;  %s2052_s14 = sshll.u32 %s2603_s17, 4 }
  0x30   : > { %s3025_s3 = sld [smem:[#allocation23_spill]]  ;;  %s763_s0 = scalar_lea.vmem %s2972_s11, %s2603_s17 }
  0x31   : > { %s3027_s4 = sld [smem:[#allocation24_spill]]  ;;  %s771_s24 = scalar_lea.vmem %s2974_s13, %s2603_s17 }
  0x32   : > { %s3028_s6 = sld [smem:[#allocation25_spill]]  ;;  %s2675_s1 = scalar_lea.vmem [#allocation3], %s1997_s26 }
  0x33   : > { %s3031_s10 = sld [smem:[#allocation28_spill]] }
  0x34   : > { %s720_s28 = scalar_lea.vmem %s3023_s19, %s2049_s20  ;;  %s3033_s27 = sld [smem:[#allocation30_spill]] }
  0x35   : > { %s2616_s22 = scalar_lea.vmem %s3024_s2, %s2049_s20  ;;  %s3035_s19 = sld [smem:[#allocation9_spill]] }
  0x36   : > { %s2621_s15 = scalar_lea.vmem %s3025_s3, %s2049_s20  ;;  %s3032_s3 = sld [smem:[#allocation29_spill]] }
  0x37   : > { %3026 = sst [smem:[#allocation19_spill]] %s2621_s15  ;;  %s738_s29 = scalar_lea.vmem %s3027_s4, %s2052_s14 }
  0x38   : > { %s2634_s16 = scalar_lea.vmem %s3028_s6, %s2052_s14  ;;  %s2055_s6 = sshll.u32 %s2603_s17, 5 }
  0x39   : > { %s2651_s23 = scalar_lea.vmem %s3031_s10, %s2052_s14  ;;  %s3034_s10 = sld [smem:[#allocation31_spill]] }
  0x3a   : > { %s774_s4 = scalar_lea.vmem %s3033_s27, %s2603_s17 }
  0x3b   : > { %p2012_p0 = scmp.ne.s32.totalorder %s3035_s19, 0 }
  0x3c   : > { %s2665_s8 = scalar_lea.vmem %s3032_s3, %s2055_s6 }
  0x3d   : > { %782 = sbr.rel (%p2012_p0) target bundleno = 68 (0x44), region = 88 }
  0x3f   : > { %s777_s9 = scalar_lea.vmem %s3034_s10, %s2603_s17 }
  0x42   : > { %v783_v0 = vld [vmem:[%s720_s28] sm:$0xff]  ;;  %vm785_vm0 = vcmask 261120   ;;  %v784_v1 = vld [vmem:[%s720_s28 + $0x8] sm:$0xff] }
  0x43   : > { %786 = vst.msk [vmem:[#allocation2] sm:$0xff] %vm785_vm0, %v783_v0  ;;  %787 = vst.msk [vmem:[#allocation2 + $0x8] sm:$0xff] %vm785_vm0, %v784_v1 }
  0x44 PF: > { %v2277_v2 = vld [vmem:[%s738_s29 + $0x8] sm:$0xff]   ;;  %v2421_v3 = vmov 0.0   ;;  %v2278_v4 = vld [vmem:[%s738_s29] sm:$0xff]   ;;  %vm2422_vm1 = vmmov 0   ;;  %vm840_vm2 = vcmask 261120   ;;  %s3036_s10 = scalar_lea.vmem %s2966_s5, %s2603_s17  ;;  %s2423_s26 = smov 96   ;;  %v810_v35 = vlaneseq }
  0x45   : > { %2087 = vmatprep.subr.bf16.mxu0 %v2421_v3  ;;  %2095 = vmatprep.subr.bf16.mxu1 %v2421_v3  ;;  %v2013_v8 = vld [vmem:[%s3036_s10] ss:$0 sm:$0xff]  ;;  %s2424_s28 = smov 120   ;;  %s2425_s29 = smov 88   ;;  %v793_v20 = vld [vmem:[%s2616_s22 + $0x8] sm:$0xff]  ;;  %v2430_v21 = vmov 0  }
  0x46   : > { %2088 = vmatpush3.bf16.msra.mxu0 %v2277_v2  ;;  %2091 = vmatprep.mubr.msk.bf16.mxu0 %vm2422_vm1, %v2421_v3  ;;  %s2426_s27 = smov 80   ;;  %s2427_s2 = smov 112   ;;  %v792_v19 = vld [vmem:[%s2616_s22] sm:$0xff]  ;;  %vm797_vm4 = vcmp.eq.f32.partialorder %v793_v20, 0.0  ;;  %vm905_vm5 = vcmask 64512   ;;  %v811_v37 = vshrl.u32 %v810_v35, 7 }
  0x47   : > { %2089 = vmatprep.subr.bf16.mxu0 %v2421_v3  ;;  %2097 = vmatprep.mubr.msk.bf16.mxu1 %vm2422_vm1, %v2421_v3  ;;  %s2428_s18 = smov 72   ;;  %s2429_s25 = smov 104   ;;  %vm796_vm3 = vcmp.eq.f32.partialorder %v792_v19, 0.0  ;;  %v800_v23 = vsel %vm797_vm4, 1, %v2430_v21  ;;  %vm955_vm11 = vcmask 130048   ;;  %vm1425_vm13 = vcmask 195584  }
  0x48   : > { %2260 = vset.pattern.permute.xlu1 %v2430_v21  ;;  %2261 = vset.pattern.permute.xlu0 %v2430_v21  ;;  %v799_v22 = vsel %vm796_vm3, 1, %v2430_v21  ;;  %s3037_s15 = sld [smem:[#allocation21_spill]]  ;;  %v812_v38 = vsub.s32 0, %v811_v37  ;;  %s2431_s14 = smov 64   ;;  %vm1653_vm14 = vcmask 523264  }
  0x49   : > { %s2432_s30 = smov 56   ;;  %s2433_s19 = smov 48  }
  0x4a   : > { %v2682_v5 = vld [vmem:[#allocation2] sm:$0xff]  ;;  %v2684_v6 = vld [vmem:[#allocation2 + $0x8] sm:$0xff]  ;;  %2090 = vmatpush3.bf16.msra.mxu0 %v2278_v4  ;;  %s2434_s3 = smov 40   ;;  %s2435_s6 = smov 8  }
  0x4b   : > { %v790_v7 = vpack.c.bf16 %v2684_v6, %v2682_v5  ;;  %2101 = vmatprep.subr.bf16.mxu0 %v2421_v3  ;;  %s2436_s10 = smov 16   ;;  %s3047_s20 = sld [smem:[#allocation27_spill]] }
  0x4d   : > { %2092 = vmatmul.mubr.msk.bf16.vlgmr.msra.gmra.mxu0 %vm840_vm2, %v790_v7 }
  0x4e   : > { %2103 = vmatprep.mubr.msk.bf16.mxu0 %vm2422_vm1, %v2421_v3  ;;  %s3038_s12 = scalar_lea.vmem %s3037_s15, %s2600_s21  ;;  %s3043_s21 = sld [smem:[#allocation19_spill]] }
  0x4f   : > { %v791_v36 = vld [vmem:[%s3038_s12] sm:$0x1] }
  0x50   : > { %vm798_vm6 = vcmp.eq.f32.partialorder %v791_v36, 0.0 }
  0x51   : > { %v809_v39 = vsel %vm798_vm6, 1, %v2430_v21  ;;  %s3048_s15 = scalar_lea.vmem %s3047_s20, %s2603_s17 }
  0x52   : > { %v813_v40 = vrot.slane %v809_v39, %v812_v38 }
  0x54   : > { %vm814_vm7 = vcmp.eq.s32.totalorder %v813_v40, 1  ;;  %v795_v19 = vld [vmem:[%s3043_s21 + $0x8] sm:$0xff] }
 0x10d   : > { %v878_v9 = vpop.f32.mrf.mxu0 }
 0x10e   : > { %v2700_v11 = vadd.f32 %v2013_v8, %v878_v9 }
 0x10f   : > { %v2093_v10 = vpop.f32.mrf.mxu0 }
 0x110   : > { %v885_v15 = vmul.f32 0.35355338, %v2700_v11 }
 0x111   : > { %v881_v12 = vpop.f32.mrf.mxu0 }
 0x112   : > { %v2702_v13 = vadd.f32 %v2013_v8, %v881_v12 }
 0x113   : > { %v2094_v14 = vpop.f32.mrf.mxu0 }
 0x114   : > { %v886_v16 = vmul.f32 0.35355338, %v2702_v13  ;;  %v900_v17 = vpack.c.bf16 %v2702_v13, %v2700_v11 }
 0x116   : > { %v899_v18 = vpack.c.bf16 %v886_v16, %v885_v15  ;;  %903 = vrot.lane.b32.xlu0 %v900_v17, %s2423_s26  ;;  %s2437_s26 = smov 24  }
 0x118   : > { %1028 = vrot.lane.b32.xlu1 %v899_v18, %s2424_s28 }
 0x11a   : > { %1030 = vrot.lane.b32.xlu0 %v900_v17, %s2425_s29  ;;  %s3044_s29 = scalar_lea.vmem %s2968_s7, %s2603_s17 }
 0x11c   : > { %1153 = vrot.lane.b32.xlu1 %v900_v17, %s2426_s27 }
 0x11e   : > { %1151 = vrot.lane.b32.xlu0 %v899_v18, %s2427_s2  ;;  %s3045_s2 = sld [smem:[#allocation26_spill]] }
 0x120   : > { %1276 = vrot.lane.b32.xlu1 %v900_v17, %s2428_s18 }
 0x122   : > { %1274 = vrot.lane.b32.xlu0 %v899_v18, %s2429_s25 }
 0x124   : > { %802 = vperm.xlu1 %2260, %v799_v22   ;;  %s3046_s18 = scalar_lea.vmem %s3045_s2, %s2603_s17 }
 0x126   : > { %805 = vperm.xlu0 %2261, %v800_v23  }
 0x188   : > { %v904_v24 = vpop.permute.xlu0 %903 }
 0x189   : > { %v910_v25 = vsel %vm905_vm5, %v904_v24, 0 }
 0x18a   : > { %2096 = vmatpush3.bf16.xpose.msra.mxu1 %v910_v25  ;;  %v1029_v27 = vpop.permute.xlu1 %1028 }
 0x18b   : > { %2107 = vmatprep.subr.bf16.mxu1 %v2421_v3 }
 0x18c   : > { %v1031_v26 = vpop.permute.xlu0 %1030 }
 0x18d   : > { %v1036_v28 = vsel %vm905_vm5, %v1031_v26, 0 }
 0x18e   : > { %v1154_v29 = vpop.permute.xlu1 %1153 }
 0x18f   : > { %v1159_v30 = vsel %vm905_vm5, %v1154_v29, 0 }
 0x190   : > { %v1152_v32 = vpop.permute.xlu0 %1151 }
 0x191   : > { %2098 = vmatmul.mubr.msk.bf16.vlgmr.msra.gmra.mxu1 %vm905_vm5, %v899_v18  ;;  %v794_v18 = vld [vmem:[%s3043_s21] sm:$0xff] }
 0x192   : > { %2108 = vmatpush3.bf16.xpose.msra.mxu1 %v1036_v28  ;;  %2109 = vmatprep.mubr.msk.bf16.mxu1 %vm2422_vm1, %v2421_v3  ;;  %v1277_v31 = vpop.permute.xlu1 %1276 }
 0x193   : > { %2119 = vmatprep.subr.bf16.mxu1 %v2421_v3  ;;  %v1282_v33 = vsel %vm905_vm5, %v1277_v31, 0 }
 0x194   : > { %v1275_v34 = vpop.permute.xlu0 %1274 }
 0x199   : > { %2110 = vmatmul.mubr.msk.bf16.vlgmr.msra.gmra.mxu1 %vm905_vm5, %v1029_v27 }
 0x19a   : > { %2120 = vmatpush3.bf16.xpose.msra.mxu1 %v1159_v30  ;;  %2121 = vmatprep.mubr.msk.bf16.mxu1 %vm2422_vm1, %v2421_v3 }
 0x19b   : > { %2131 = vmatprep.subr.bf16.mxu1 %v2421_v3 }
 0x19f   : > { %v803_v41 = vpop.permute.xlu1 %802 }
 0x1a0   : > { %vm807_vm8 = vcmp.eq.s32.totalorder %v803_v41, 1 }
 0x1a1   : > { %2122 = vmatmul.mubr.msk.bf16.vlgmr.msra.gmra.mxu1 %vm905_vm5, %v1152_v32  ;;  %v806_v42 = vpop.permute.xlu0 %805  ;;  %vm2735_vm9 = vmor %vm807_vm8, %vm814_vm7 }
 0x1a2   : > { %2132 = vmatpush3.bf16.xpose.msra.mxu1 %v1282_v33  ;;  %2133 = vmatprep.mubr.msk.bf16.mxu1 %vm2422_vm1, %v2421_v3  ;;  %vm808_vm10 = vcmp.eq.s32.totalorder %v806_v42, 1 }
 0x1a3   : > { %2143 = vmatprep.subr.bf16.mxu1 %v2421_v3  ;;  %vm2743_vm12 = vmor %vm808_vm10, %vm814_vm7 }
 0x1a9   : > { %2134 = vmatmul.mubr.msk.bf16.vlgmr.msra.gmra.mxu1 %vm905_vm5, %v1275_v34 }
 0x1aa   : > { %2147 = vmatprep.mubr.msk.bf16.mxu1 %vm2422_vm1, %v2421_v3 }
 0x251   : > { %v946_v44 = vpop.f32.mrf.mxu1 }
 0x252   : > { %v2741_v45 = vsel %vm2735_vm9, -10000.0, %v946_v44 }
 0x253   : > { %v2099_v47 = vpop.f32.mrf.mxu1  ;;  %v956_v48 = vsel %vm955_vm11, %v2741_v45, -inf }
 0x254   : > { %957 = vmax.xlane.f32.xlu1 %v956_v48 }
 0x255   : > { %v949_v49 = vpop.f32.mrf.mxu1 }
 0x256   : > { %v954_v50 = vsel %vm2743_vm12, -10000.0, %v949_v49 }
 0x257   : > { %v2100_v51 = vpop.f32.mrf.mxu1  ;;  %v959_v52 = vsel %vm955_vm11, %v954_v50, -inf }
 0x258   : > { %960 = vmax.xlane.f32.xlu0 %v959_v52 }
 0x259   : > { %v1072_v53 = vpop.f32.mrf.mxu1 }
 0x25a   : > { %v2754_v54 = vsel %vm2735_vm9, -10000.0, %v1072_v53 }
 0x25b   : > { %v2111_v55 = vpop.f32.mrf.mxu1  ;;  %v1081_v56 = vsel %vm955_vm11, %v2754_v54, -inf }
 0x25c   : > { %1082 = vmax.xlane.f32.xlu1 %v1081_v56 }
 0x25d   : > { %v1075_v57 = vpop.f32.mrf.mxu1 }
 0x25e   : > { %v1080_v58 = vsel %vm2743_vm12, -10000.0, %v1075_v57 }
 0x25f   : > { %v2112_v59 = vpop.f32.mrf.mxu1  ;;  %v1084_v60 = vsel %vm955_vm11, %v1080_v58, -inf }
 0x260   : > { %1085 = vmax.xlane.f32.xlu0 %v1084_v60 }
 0x261   : > { %v1195_v61 = vpop.f32.mrf.mxu1 }
 0x262   : > { %v2763_v62 = vsel %vm2735_vm9, -10000.0, %v1195_v61 }
 0x263   : > { %v2123_v63 = vpop.f32.mrf.mxu1  ;;  %v1204_v0 = vsel %vm955_vm11, %v2763_v62, -inf }
 0x264   : > { %1205 = vmax.xlane.f32.xlu1 %v1204_v0 }
 0x265   : > { %v1198_v1 = vpop.f32.mrf.mxu1 }
 0x266   : > { %v1203_v2 = vsel %vm2743_vm12, -10000.0, %v1198_v1 }
 0x267   : > { %v2124_v4 = vpop.f32.mrf.mxu1  ;;  %v1207_v7 = vsel %vm955_vm11, %v1203_v2, -inf }
 0x268   : > { %1208 = vmax.xlane.f32.xlu0 %v1207_v7 }
 0x269   : > { %v1318_v8 = vpop.f32.mrf.mxu1 }
 0x26a   : > { %v1325_v9 = vsel %vm2735_vm9, -10000.0, %v1318_v8 }
 0x26b   : > { %v2135_v10 = vpop.f32.mrf.mxu1  ;;  %v1327_v12 = vsel %vm955_vm11, %v1325_v9, -inf }
 0x26c   : > { %1328 = vmax.xlane.f32.xlu1 %v1327_v12 }
 0x26d   : > { %v1321_v14 = vpop.f32.mrf.mxu1 }
 0x26e   : > { %v1326_v15 = vsel %vm2743_vm12, -10000.0, %v1321_v14 }
 0x26f   : > { %v2136_v16 = vpop.f32.mrf.mxu1  ;;  %v1330_v17 = vsel %vm955_vm11, %v1326_v15, -inf }
 0x270   : > { %1331 = vmax.xlane.f32.xlu0 %v1330_v17 }
 0x27d   : > { %889 = vperm.xlu1 %2260, %v794_v18  }
 0x286   : > { %894 = vperm.xlu0 %2261, %v795_v19  }
 0x2dd   : > { %v958_v26 = vpop.xlane.xlu1 %957 }
 0x2e1   : > { %v961_v20 = vpop.xlane.xlu0 %960 }
 0x2e2   : > { %v963_v21 = vsub.f32 %v954_v50, %v961_v20  ;;  %v962_v50 = vsub.f32 %v2741_v45, %v958_v26 }
 0x2e4   : > { %v966_v22 = vmul.f32 1.442695, %v963_v21 }
 0x2e5   : > { %v1083_v27 = vpop.xlane.xlu1 %1082 }
 0x2e6   : > { %2287 = vpow2.f32 %v966_v22 }
 0x2e9   : > { %v1086_v23 = vpop.xlane.xlu0 %1085 }
 0x2ea   : > { %v1088_v24 = vsub.f32 %v1080_v58, %v1086_v23 }
 0x2ec   : > { %v1091_v25 = vmul.f32 1.442695, %v1088_v24 }
 0x2ed   : > { %v1206_v33 = vpop.xlane.xlu1 %1205 }
 0x2ee   : > { %2289 = vpow2.f32 %v1091_v25  ;;  %v1210_v52 = vsub.f32 %v2763_v62, %v1206_v33 }
 0x2f0   : > { %v1212_v53 = vmul.f32 1.442695, %v1210_v52 }
 0x2f1   : > { %v1209_v28 = vpop.xlane.xlu0 %1208 }
 0x2f2   : > { %v1211_v29 = vsub.f32 %v1203_v2, %v1209_v28 }
 0x2f3   : > { %v2778_v30 = vpop.eup %2287 }
 0x2f4   : > { %v1214_v31 = vmul.f32 1.442695, %v1211_v29  ;;  %v971_v32 = vsel %vm955_vm11, %v2778_v30, 0.0 }
 0x2f5   : > { %972 = vadd.xlane.f32.xlu0 %v971_v32  ;;  %v1329_v34 = vpop.xlane.xlu1 %1328 }
 0x2f6   : > { %2291 = vpow2.f32 %v1214_v31  ;;  %v1333_v55 = vsub.f32 %v1325_v9, %v1329_v34 }
 0x2f8   : > { %v1335_v56 = vmul.f32 1.442695, %v1333_v55 }
 0x2f9   : > { %v1332_v35 = vpop.xlane.xlu0 %1331  ;;  %v890_v40 = vpop.permute.xlu1 %889 }
 0x2fa   : > { %v1334_v36 = vsub.f32 %v1326_v15, %v1332_v35  ;;  %v897_v42 = vmul.f32 %v890_v40, %v2700_v11  ;;  %v964_v11 = vmul.f32 1.442695, %v962_v50 }
 0x2fb   : > { %v2782_v37 = vpop.eup %2289 }
 0x2fc   : > { %v1337_v38 = vmul.f32 1.442695, %v1334_v36  ;;  %v1096_v39 = vsel %vm955_vm11, %v2782_v37, 0.0 }
 0x2fd   : > { %1097 = vadd.xlane.f32.xlu0 %v1096_v39 }
 0x2fe   : > { %2293 = vpow2.f32 %v1337_v38 }
 0x2ff   : > { %2295 = vpow2.f32 %v964_v11 }
 0x301   : > { %v895_v41 = vpop.permute.xlu0 %894 }
 0x302   : > { %v898_v43 = vmul.f32 %v895_v41, %v2702_v13  ;;  %v1087_v13 = vsub.f32 %v2754_v54, %v1083_v27 }
 0x303   : > { %v2788_v44 = vpop.eup %2291 }
 0x304   : > { %v901_v46 = vpack.c.bf16 %v898_v43, %v897_v42  ;;  %v1219_v47 = vsel %vm955_vm11, %v2788_v44, 0.0  ;;  %v1089_v51 = vmul.f32 1.442695, %v1087_v13  ;;  %v2279_v43 = vld [vmem:[%s2634_s16 + $0x8] sm:$0xff]  }
 0x305   : > { %1220 = vadd.xlane.f32.xlu0 %v1219_v47  ;;  %2144 = vmatpush3.bf16.msra.mxu1 %v2279_v43 }
 0x306   : > { %980 = vrot.lane.b32.xlu1 %v901_v46, %s2431_s14  ;;  %2297 = vpow2.f32 %v1089_v51  ;;  %2145 = vmatprep.subr.bf16.mxu1 %v2421_v3 }
 0x307   : > { %2299 = vpow2.f32 %v1212_v53 }
 0x308   : > { %2301 = vpow2.f32 %v1335_v56 }
 0x30b   : > { %v2792_v48 = vpop.eup %2293 }
 0x30c   : > { %v1342_v49 = vsel %vm955_vm11, %v2792_v48, 0.0  ;;  %v2296_v57 = vpop.eup %2295 }
 0x30d   : > { %1343 = vadd.xlane.f32.xlu0 %v1342_v49  ;;  %v968_v58 = vsel %vm955_vm11, %v2296_v57, 0.0  ;;  %v2280_v49 = vld [vmem:[%s2634_s16] sm:$0xff]  }
 0x30e   : > { %2146 = vmatpush3.bf16.msra.mxu1 %v2280_v49 }
 0x30f   : > { %2159 = vmatprep.subr.bf16.mxu1 %v2421_v3 }
 0x313   : > { %v2298_v59 = vpop.eup %2297 }
 0x314   : > { %v1093_v45 = vsel %vm955_vm11, %v2298_v59, 0.0  ;;  %v2300_v54 = vpop.eup %2299 }
 0x315   : > { %v1216_v60 = vsel %vm955_vm11, %v2300_v54, 0.0  ;;  %v2302_v61 = vpop.eup %2301 }
 0x316   : > { %v1339_v62 = vsel %vm955_vm11, %v2302_v61, 0.0 }
 0x323   : > { %1104 = vrot.lane.b32.xlu0 %v901_v46, %s2432_s30 }
 0x32a   : > { %969 = vadd.xlane.f32.xlu1 %v968_v58 }
 0x32e   : > { %1094 = vadd.xlane.f32.xlu1 %v1093_v45 }
 0x332   : > { %1217 = vadd.xlane.f32.xlu1 %v1216_v60 }
 0x336   : > { %1340 = vadd.xlane.f32.xlu1 %v1339_v62 }
 0x347   : > { %1227 = vrot.lane.b32.xlu1 %v901_v46, %s2433_s19 }
 0x34b   : > { %1350 = vrot.lane.b32.xlu1 %v901_v46, %s2434_s3 }
 0x378   : > { %v981_v63 = vpop.permute.xlu1 %980 }
 0x379   : > { %2102 = vmatpush3.bf16.msra.mxu0 %v981_v63 }
 0x37a   : > { %2113 = vmatprep.subr.bf16.mxu0 %v2421_v3 }
 0x37e   : > { %v973_v0 = vpop.xlane.xlu0 %972 }
 0x37f   : > { %2303 = vrcp.f32 %v973_v0 }
 0x386   : > { %v1098_v2 = vpop.xlane.xlu0 %1097 }
 0x38c   : > { %v2304_v9 = vpop.eup %2303 }
 0x38d   : > { %v977_v15 = vmul.f32 %v2304_v9, %v2778_v30 }
 0x38e   : > { %v1221_v7 = vpop.xlane.xlu0 %1220 }
 0x396   : > { %v1344_v10 = vpop.xlane.xlu0 %1343 }
 0x39a   : > { %v1105_v19 = vpop.permute.xlu0 %1104 }
 0x3b3   : > { %v970_v1 = vpop.xlane.xlu1 %969 }
 0x3b4   : > { %2305 = vrcp.f32 %v970_v1 }
 0x3b7   : > { %v1095_v4 = vpop.xlane.xlu1 %1094 }
 0x3b8   : > { %2307 = vrcp.f32 %v1095_v4 }
 0x3b9   : > { %2309 = vrcp.f32 %v1098_v2 }
 0x3bb   : > { %v1218_v8 = vpop.xlane.xlu1 %1217 }
 0x3bc   : > { %2311 = vrcp.f32 %v1218_v8 }
 0x3bd   : > { %2313 = vrcp.f32 %v1221_v7 }
 0x3bf   : > { %v1341_v18 = vpop.xlane.xlu1 %1340 }
 0x3c0   : > { %2315 = vrcp.f32 %v1341_v18 }
 0x3c1   : > { %v2306_v12 = vpop.eup %2305  ;;  %2317 = vrcp.f32 %v1344_v10  ;;  %v2025_v10 = vld [vmem:[%s3044_s29] ss:$0 sm:$0xff] }
 0x3c2   : > { %v976_v14 = vmul.f32 %v2306_v12, %v2296_v57 }
 0x3c3   : > { %v1228_v25 = vpop.permute.xlu1 %1227 }
 0x3c4   : > { %v978_v16 = vpack.c.bf16 %v977_v15, %v976_v14 }
 0x3c5   : > { %v2308_v17 = vpop.eup %2307 }
 0x3c6   : > { %2104 = vmatmul.mubr.msk.bf16.vlgmr.msra.gmra.mxu0 %vm955_vm11, %v978_v16  ;;  %v2310_v20 = vpop.eup %2309  ;;  %v1101_v21 = vmul.f32 %v2308_v17, %v2298_v59 }
 0x3c7   : > { %2114 = vmatpush3.bf16.msra.mxu0 %v1105_v19  ;;  %2115 = vmatprep.mubr.msk.bf16.mxu0 %vm2422_vm1, %v2421_v3  ;;  %v1102_v22 = vmul.f32 %v2310_v20, %v2782_v37  ;;  %v1351_v31 = vpop.permute.xlu1 %1350 }
 0x3c8   : > { %2125 = vmatprep.subr.bf16.mxu0 %v2421_v3 }
 0x3c9   : > { %v1103_v23 = vpack.c.bf16 %v1102_v22, %v1101_v21  ;;  %v2312_v24 = vpop.eup %2311 }
 0x3ca   : > { %v2314_v26 = vpop.eup %2313  ;;  %v1224_v27 = vmul.f32 %v2312_v24, %v2300_v54 }
 0x3cb   : > { %v1225_v28 = vmul.f32 %v2314_v26, %v2788_v44 }
 0x3cd   : > { %v1226_v29 = vpack.c.bf16 %v1225_v28, %v1224_v27  ;;  %v2316_v30 = vpop.eup %2315 }
 0x3ce   : > { %2116 = vmatmul.mubr.msk.bf16.vlgmr.msra.gmra.mxu0 %vm955_vm11, %v1103_v23  ;;  %v2318_v32 = vpop.eup %2317  ;;  %v1347_v33 = vmul.f32 %v2316_v30, %v2302_v61 }
 0x3cf   : > { %2126 = vmatpush3.bf16.msra.mxu0 %v1228_v25  ;;  %2127 = vmatprep.mubr.msk.bf16.mxu0 %vm2422_vm1, %v2421_v3  ;;  %v1348_v34 = vmul.f32 %v2318_v32, %v2792_v48  ;;  %v2282_v32 = vld [vmem:[%s2651_s23] sm:$0xff]  }
 0x3d0   : > { %2137 = vmatprep.subr.bf16.mxu0 %v2421_v3 }
 0x3d1   : > { %v1349_v35 = vpack.c.bf16 %v1348_v34, %v1347_v33  ;;  %v2283_v33 = vld [vmem:[%s2665_s8 + $0x18] sm:$0xff]  }
 0x3d6   : > { %2128 = vmatmul.mubr.msk.bf16.vlgmr.msra.gmra.mxu0 %vm955_vm11, %v1226_v29 }
 0x3d7   : > { %2138 = vmatpush3.bf16.msra.mxu0 %v1351_v31  ;;  %2139 = vmatprep.mubr.msk.bf16.mxu0 %vm2422_vm1, %v2421_v3 }
 0x3d8   : > { %2151 = vmatprep.subr.bf16.mxu0 %v2421_v3 }
 0x3de   : > { %2140 = vmatmul.mubr.msk.bf16.vlgmr.msra.gmra.mxu0 %vm955_vm11, %v1349_v35 }
 0x3df   : > { %2155 = vmatprep.mubr.msk.bf16.mxu0 %vm2422_vm1, %v2421_v3 }
 0x486   : > { %v1020_v36 = vpop.f32.mrf.mxu0 }
 0x488   : > { %v2105_v37 = vpop.f32.mrf.mxu0 }
 0x48a   : > { %v1023_v38 = vpop.f32.mrf.mxu0 }
 0x48c   : > { %v2106_v39 = vpop.f32.mrf.mxu0 }
 0x48e   : > { %v1144_v40 = vpop.f32.mrf.mxu0 }
 0x490   : > { %v2117_v41 = vpop.f32.mrf.mxu0 }
 0x492   : > { %v1147_v42 = vpop.f32.mrf.mxu0 }
 0x493   : > { %v2262_v44 = vpack.i.bf16 %v1147_v42, %v1144_v40  ;;  %v2029_v42 = vld [vmem:[%s3046_s18] ss:$0 sm:$0xff] }
 0x494   : > { %v2118_v46 = vpop.f32.mrf.mxu0 }
 0x495   : > { %2263 = vrot.lane.b32.xlu0 %v2262_v44, %s2435_s6 }
 0x496   : > { %v1267_v47 = vpop.f32.mrf.mxu0 }
 0x498   : > { %v2129_v48 = vpop.f32.mrf.mxu0 }
 0x49a   : > { %v1270_v50 = vpop.f32.mrf.mxu0 }
 0x49b   : > { %v2267_v11 = vpack.i.bf16 %v1270_v50, %v1267_v47  ;;  %v2030_v47 = vld [vmem:[%s3048_s15] ss:$0 sm:$0xff] }
 0x49c   : > { %v2130_v13 = vpop.f32.mrf.mxu0 }
 0x49d   : > { %2268 = vrot.lane.b32.xlu1 %v2267_v11, %s2436_s10  ;;  %v2284_v13 = vld [vmem:[%s2665_s8 + $0x10] sm:$0xff]  }
 0x49e   : > { %v1390_v51 = vpop.f32.mrf.mxu0 }
 0x4a0   : > { %v2141_v52 = vpop.f32.mrf.mxu0 }
 0x4a1   : > { %v2286_v52 = vld [vmem:[%s2665_s8] sm:$0xff]  }
 0x4a2   : > { %v1393_v53 = vpop.f32.mrf.mxu0 }
 0x4a3   : > { %v2272_v55 = vpack.i.bf16 %v1393_v53, %v1390_v51  ;;  %v2285_v51 = vld [vmem:[%s2665_s8 + $0x8] sm:$0xff]   ;;  %v2031_v53 = vld [vmem:[%s763_s0] ss:$0 sm:$0xff] }
 0x4a4   : > { %v2142_v56 = vpop.f32.mrf.mxu0 }
 0x4a5   : > { %2273 = vrot.lane.b32.xlu0 %v2272_v55, %s2437_s26  ;;  %s3051_s26 = sld [smem:[#allocation9_spill]] }
 0x4ab   : > { %p2043_p1 = scmp.ne.s32.totalorder %s3051_s26, 1 }
 0x507   : > { %v2264_v57 = vpop.permute.xlu0 %2263 }
 0x508   : > { %v2266_v59 = vunpack.i.h.bf16 %v2264_v57  ;;  %v2265_v45 = vunpack.i.l.bf16 %v2264_v57 }
 0x50a   : > { %v1422_v62 = vsel %vm905_vm5, %v1023_v38, %v2266_v59  ;;  %v1421_v63 = vsel %vm905_vm5, %v1020_v36, %v2265_v45 }
 0x50f   : > { %v2269_v58 = vpop.permute.xlu1 %2268 }
 0x510   : > { %v2271_v54 = vunpack.i.h.bf16 %v2269_v58  ;;  %v2270_v60 = vunpack.i.l.bf16 %v2269_v58 }
 0x512   : > { %v1424_v2 = vsel %vm955_vm11, %v1422_v62, %v2271_v54  ;;  %v1423_v4 = vsel %vm955_vm11, %v1421_v63, %v2270_v60 }
 0x517   : > { %v2274_v61 = vpop.permute.xlu0 %2273 }
 0x518   : > { %v2276_v0 = vunpack.i.h.bf16 %v2274_v61  ;;  %v2275_v1 = vunpack.i.l.bf16 %v2274_v61 }
 0x51a   : > { %v1427_v7 = vsel %vm1425_vm13, %v1424_v2, %v2276_v0  ;;  %v1426_v8 = vsel %vm1425_vm13, %v1423_v4, %v2275_v1 }
 0x51b   : > { %v1428_v9 = vpack.c.bf16 %v1427_v7, %v1426_v8 }
 0x51d   : > { %2148 = vmatmul.mubr.msk.bf16.vlgmr.msra.gmra.mxu1 %vm840_vm2, %v1428_v9 }
 0x51e   : > { %2167 = vmatprep.mubr.msk.bf16.mxu1 %vm2422_vm1, %v2421_v3  ;;  %2160 = vmatpush3.bf16.msra.mxu1 %v2283_v33 }
 0x51f   : > { %2161 = vmatprep.subr.bf16.mxu1 %v2421_v3 }
 0x522   : > { %2162 = vmatpush3.bf16.msra.mxu1 %v2284_v13 }
 0x523   : > { %2163 = vmatprep.subr.bf16.mxu1 %v2421_v3 }
 0x526   : > { %2164 = vmatpush3.bf16.msra.mxu1 %v2285_v51 }
 0x527   : > { %2165 = vmatprep.subr.bf16.mxu1 %v2421_v3 }
 0x52a   : > { %2166 = vmatpush3.bf16.msra.mxu1 %v2286_v52 }
 0x5dd   : > { %v1489_v12 = vpop.f32.mrf.mxu1 }
 0x5de   : > { %v1490_v14 = vadd.f32 %v2025_v10, %v1489_v12 }
 0x5df   : > { %v2149_v15 = vpop.f32.mrf.mxu1 }
 0x5e0   : > { %v1496_v16 = vadd.f32 %v1490_v14, %v2682_v5 }
 0x5e1   : > { %v1492_v17 = vpop.f32.mrf.mxu1 }
 0x5e2   : > { %v1493_v18 = vadd.f32 %v2025_v10, %v1492_v17  ;;  %v1498_v19 = vsel %vm840_vm2, %v1496_v16, 0.0 }
 0x5e3   : > { %1499 = vadd.xlane.f32.xlu1 %v1498_v19  ;;  %v2150_v20 = vpop.f32.mrf.mxu1 }
 0x5e4   : > { %v1497_v21 = vadd.f32 %v1493_v18, %v2684_v6  ;;  %v2281_v6 = vld [vmem:[%s2651_s23 + $0x8] sm:$0xff]  }
 0x5e5   : > { %2152 = vmatpush3.bf16.msra.mxu0 %v2281_v6 }
 0x5e6   : > { %v1501_v22 = vsel %vm840_vm2, %v1497_v21, 0.0  ;;  %2153 = vmatprep.subr.bf16.mxu0 %v2421_v3  ;;  %v2035_v3 = vld [vmem:[%s771_s24] ss:$0 sm:$0xff] }
 0x5e7   : > { %1502 = vadd.xlane.f32.xlu0 %v1501_v22 }
 0x5e9   : > { %2154 = vmatpush3.bf16.msra.mxu0 %v2282_v32 }
 0x66c   : > { %v1500_v23 = vpop.xlane.xlu1 %1499 }
 0x66d   : > { %v1505_v24 = vmul.f32 0.03125, %v1500_v23 }
 0x66f   : > { %v1507_v25 = vsub.f32 %v1496_v16, %v1505_v24 }
 0x670   : > { %v1503_v26 = vpop.xlane.xlu0 %1502 }
 0x671   : > { %v1506_v27 = vmul.f32 0.03125, %v1503_v26  ;;  %v1509_v5 = vmul.f32 %v1507_v25, %v1507_v25 }
 0x673   : > { %v1508_v28 = vsub.f32 %v1497_v21, %v1506_v27  ;;  %v1511_v29 = vsel %vm840_vm2, %v1509_v5, 0.0 }
 0x674   : > { %1512 = vadd.xlane.f32.xlu0 %v1511_v29  ;;  %v2041_v29 = vld [vmem:[%s774_s4] ss:$0 sm:$0xff] }
 0x675   : > { %v1510_v30 = vmul.f32 %v1508_v28, %v1508_v28 }
 0x677   : > { %v1514_v31 = vsel %vm840_vm2, %v1510_v30, 0.0 }
 0x678   : > { %1515 = vadd.xlane.f32.xlu1 %v1514_v31  ;;  %v2042_v31 = vld [vmem:[%s777_s9] ss:$0 sm:$0xff] }
 0x6fd   : > { %v1513_v34 = vpop.xlane.xlu0 %1512 }
 0x6fe   : > { %v1517_v35 = vmul.f32 0.03125, %v1513_v34 }
 0x700   : > { %v1519_v36 = vadd.f32 1e-12, %v1517_v35 }
 0x701   : > { %v1516_v37 = vpop.xlane.xlu1 %1515 }
 0x702   : > { %2319 = vrsqrt.f32 %v1519_v36  ;;  %v1518_v38 = vmul.f32 0.03125, %v1516_v37 }
 0x704   : > { %v1520_v39 = vadd.f32 1e-12, %v1518_v38 }
 0x706   : > { %2321 = vrsqrt.f32 %v1520_v39 }
 0x70f   : > { %v2320_v40 = vpop.eup %2319 }
 0x710   : > { %v1523_v41 = vmul.f32 %v2320_v40, %v1507_v25 }
 0x712   : > { %v1532_v46 = vmul.f32 %v2029_v42, %v1523_v41 }
 0x713   : > { %v2322_v43 = vpop.eup %2321 }
 0x714   : > { %v1524_v44 = vmul.f32 %v2322_v43, %v1508_v28  ;;  %v1541_v49 = vadd.f32 %v2030_v47, %v1532_v46 }
 0x716   : > { %v1533_v48 = vmul.f32 %v2029_v42, %v1524_v44 }
 0x718   : > { %v1542_v50 = vadd.f32 %v2030_v47, %v1533_v48 }
 0x71a   : > { %v1543_v11 = vpack.c.bf16 %v1542_v50, %v1541_v49 }
 0x71c   : > { %2156 = vmatmul.mubr.msk.bf16.vlgmr.msra.gmra.mxu0 %vm840_vm2, %v1543_v11 }
 0x7dc   : > { %v1604_v55 = vpop.f32.mrf.mxu0 }
 0x7dd   : > { %v1605_v57 = vadd.f32 %v2031_v53, %v1604_v55 }
 0x7de   : > { %v2157_v56 = vpop.f32.mrf.mxu0 }
 0x7df   : > { %v1611_v54 = vmax.f32 %v1605_v57, 0.0 }
 0x7e0   : > { %v1607_v58 = vpop.f32.mrf.mxu0 }
 0x7e1   : > { %v1608_v59 = vadd.f32 %v2031_v53, %v1607_v58 }
 0x7e2   : > { %v2158_v45 = vpop.f32.mrf.mxu0 }
 0x7e3   : > { %v1612_v60 = vmax.f32 %v1608_v59, 0.0 }
 0x7e5   : > { %v1613_v61 = vpack.c.bf16 %v1612_v60, %v1611_v54 }
 0x7e7   : > { %2168 = vmatmul.mubr.msk.bf16.vlgmr.msra.gmra.mxu1 %vm1653_vm14, %v1613_v61 }
 0x8a7   : > { %v1691_v62 = vpop.f32.mrf.mxu1 }
 0x8a8   : > { %v1692_v63 = vadd.f32 %v2035_v3, %v1691_v62 }
 0x8a9   : > { %v2169_v0 = vpop.f32.mrf.mxu1 }
 0x8aa   : > { %v1698_v1 = vadd.f32 %v1692_v63, %v1541_v49 }
 0x8ab   : > { %v1694_v2 = vpop.f32.mrf.mxu1 }
 0x8ac   : > { %v1695_v4 = vadd.f32 %v2035_v3, %v1694_v2  ;;  %v1700_v7 = vsel %vm840_vm2, %v1698_v1, 0.0 }
 0x8ad   : > { %1701 = vadd.xlane.f32.xlu0 %v1700_v7  ;;  %v2170_v8 = vpop.f32.mrf.mxu1 }
 0x8ae   : > { %v1699_v9 = vadd.f32 %v1695_v4, %v1542_v50 }
 0x8b0   : > { %v1703_v10 = vsel %vm840_vm2, %v1699_v9, 0.0 }
 0x8b1   : > { %1704 = vadd.xlane.f32.xlu1 %v1703_v10 }
 0x936   : > { %v1702_v12 = vpop.xlane.xlu0 %1701 }
 0x937   : > { %v1706_v14 = vmul.f32 0.03125, %v1702_v12 }
 0x939   : > { %v1708_v15 = vsub.f32 %v1698_v1, %v1706_v14 }
 0x93a   : > { %v1705_v16 = vpop.xlane.xlu1 %1704 }
 0x93b   : > { %v1707_v17 = vmul.f32 0.03125, %v1705_v16  ;;  %v1710_v18 = vmul.f32 %v1708_v15, %v1708_v15 }
 0x93d   : > { %v1709_v19 = vsub.f32 %v1699_v9, %v1707_v17  ;;  %v1712_v20 = vsel %vm840_vm2, %v1710_v18, 0.0 }
 0x93e   : > { %1713 = vadd.xlane.f32.xlu0 %v1712_v20 }
 0x93f   : > { %v1711_v21 = vmul.f32 %v1709_v19, %v1709_v19 }
 0x941   : > { %v1715_v22 = vsel %vm840_vm2, %v1711_v21, 0.0 }
 0x942   : > { %1716 = vadd.xlane.f32.xlu1 %v1715_v22 }
 0x9c7   : > { %v1714_v23 = vpop.xlane.xlu0 %1713 }
 0x9c8   : > { %v1718_v24 = vmul.f32 0.03125, %v1714_v23 }
 0x9ca   : > { %v1720_v25 = vadd.f32 1e-12, %v1718_v24 }
 0x9cb   : > { %v1717_v26 = vpop.xlane.xlu1 %1716 }
 0x9cc   : > { %2323 = vrsqrt.f32 %v1720_v25  ;;  %v1719_v27 = vmul.f32 0.03125, %v1717_v26 }
 0x9ce   : > { %v1721_v5 = vadd.f32 1e-12, %v1719_v27 }
 0x9d0   : > { %2325 = vrsqrt.f32 %v1721_v5 }
 0x9d9   : > { %v2324_v28 = vpop.eup %2323 }
 0x9da   : > { %v1724_v30 = vmul.f32 %v2324_v28, %v1708_v15 }
 0x9dc   : > { %v1733_v6 = vmul.f32 %v2041_v29, %v1724_v30 }
 0x9dd   : > { %v2326_v32 = vpop.eup %2325 }
 0x9de   : > { %v1742_v33 = vadd.f32 %v2042_v31, %v1733_v6  ;;  %v1725_v34 = vmul.f32 %v2326_v32, %v1709_v19 }
 0x9e0   : > { %1744 = vst.msk [vmem:[#allocation2] sm:$0xff] %vm840_vm2, %v1742_v33  ;;  %v1734_v35 = vmul.f32 %v2041_v29, %v1725_v34  ;;  %1749 = sbr.rel (%p2043_p1) target bundleno = 2534 (0x9e6), region = 92 }
 0x9e2   : > { %v1743_v36 = vadd.f32 %v2042_v31, %v1734_v35 }
 0x9e4   : > { %1745 = vst.msk [vmem:[#allocation2 + $0x8] sm:$0xff] %vm840_vm2, %v1743_v36 }
 0x9e5   : > { %1750 = vst.msk [vmem:[%s2675_s1] sm:$0xff] %vm840_vm2, %v1742_v33  ;;  %1751 = vst.msk [vmem:[%s2675_s1 + $0x8] sm:$0xff] %vm840_vm2, %v1743_v36 }
 0x9e6 PF: > { %s3052_s9 = sld [smem:[#allocation10_spill]]  ;;  %s1766_s18 = sshll.u32 %s2675_s1, 4  ;;  %s2905_s18 = int_to_ptr.vmem [resolvable:$true] %s1766_s18 }
 0x9e7   : > { %s3053_s17 = sld [smem:[#allocation7_spill]]  ;;  %s2327_s20 = scalar_lea.vmem %s2905_s18, 256 }
 0x9e8   : > { %s3055_s23 = sld [smem:[#allocation32_spill]]  ;;  %p2328_p2 = scmp.ne.s32.totalorder %s2905_s18, %s2327_s20 }
 0x9e9   : > { %s2438_s15 = smov [#allocation3]  }
 0x9ea   : > { %p2329_p4 = pnand %p2328_p2, %p2574_p3  ;;  %s2331_s12 = sshll.u32 %s2438_s15, 4  ;;  %s2332_s12 = int_to_ptr.vmem [resolvable:$false] %s2331_s12 }
 0x9eb   : > { %s2333_s21 = scalar_lea.vmem %s2332_s12, 512  ;;  %p2334_p6 = scmp.lt.s32.totalorder %s2905_s18, %s2332_s12 }
 0x9ec   : > { %s2056_s16 = sshll.u32 %s3052_s9, 8  ;;  %p2330_p5 = pneg %p2329_p4 }
 0x9ed   : > { %s3057_s25 = sand.u32 1, %s3053_s17   ;;  %p2335_p7 = scmp.lt.s32.totalorder %s2333_s21, %s2327_s20 }
 0x9ee   : > { %s3056_s2 = smov %s3055_s23  ;;  %s2902_s27 = scalar_lea.hbm %s3055_s23, %s2056_s16 }
 0x9ef   : > { %s2909_s22 = scalar_lea.sflag [#allocation4], %s3057_s25  ;;  %p2336_p8 = por %p2335_p7, %p2334_p6 }
 0x9f1   : > { %p2337_p10 = pnand %p2336_p8, %p2330_p5 }
 0x9f3   : > { %2340 = shalt.err (!%p2337_p10)
}
 0x9f4   : > { %s2341_s1 = scalar_lea.hbm %s2902_s27, 256  ;;  %s2345_s8 = scalar_lea.hbm %s3056_s2, 512 }
 0x9f5   : > { %p2342_p11 = scmp.ne.s32.totalorder %s2902_s27, %s2341_s1  ;;  %p2346_p0 = scmp.lt.s32.totalorder %s2902_s27, %s3056_s2 }
 0x9f6   : > { %p2347_p1 = scmp.lt.s32.totalorder %s2345_s8, %s2341_s1 }
 0x9f7   : > { %p2343_p12 = pnand %p2342_p11, %p2574_p3 }
 0x9f8   : > { %p2348_p2 = por %p2347_p1, %p2346_p0 }
 0x9f9   : > { %p2344_p13 = pneg %p2343_p12 }
 0x9fb   : > { %p2349_p4 = pnand %p2348_p2, %p2344_p13 }
 0x9fd   : > { %2352 = shalt.err (!%p2349_p4)
}
 0x9fe   : > { %s2439_s19 = smov 128  }
 0x9ff   : > { %2171 = dma.vmem_to_hbm [thread:$0]  (%p2574_p3), %s2905_s18, 256, %s2902_s27, %s2909_s22, %s2439_s19, %s2439_s19, %s2435_s6  }
 0xa00 PF: > { %s3058_s3 = sld [smem:[#allocation13_spill]] }
 0xa01   : > { %s3059_s10 = sld [smem:[#allocation6_spill]] }
 0xa06   : > { %p2177_p5 = scmp.ge.s32.totalorder %s3058_s3, 2 }
 0xa07   : > { %s1781_s9 = sand.u32 1, %s3059_s10  }
 0xa08   : > { %p2174_p6 = pnand %p2177_p5, %p2584_p9  ;;  %s1782_s17 = scalar_lea.sflag [#allocation4], %s1781_s9 }
 0xa0a   : > { %p2175_p7 = pneg %p2174_p6 }
 0xa0c   : > { %2386 = dma.done.wait (%p2175_p7), %s1782_s17, 256  }
 0xa0d   : > { %2388 = vsyncadd (%p2175_p7), %s1782_s17, 4294967040  ;;  %s29_s28 = sadd.s32 1, %s3058_s3   ;;  %s3061_s21 = sld [smem:[#allocation7_spill]] }
 0xa0e   : > { %p26_p8 = scmp.ge.s32.totalorder %s29_s28, 6   ;;  %s3062_s22 = sld [smem:[#allocation8_spill]] }
 0xa0f   : > { %s3063_s23 = sld [smem:[#allocation18_spill]] }
 0xa10   : > { %s3064_s24 = sld [smem:[#allocation11_spill]]  ;;  %28 = sbr.rel (!%p26_p8) target bundleno = 19 (0x13), region = 172 }
 0xa11   : > { %s3065_s25 = sld [smem:[#allocation12_spill]] }
 0xa12   : > { %s3066_s26 = sld [smem:[#allocation14_spill]] }
 0xa13   : > { %s3067_s27 = sld [smem:[#allocation16_spill]] }
 0xa15   :  { %1787 = vsyncpa [#allocation4], 1 }
 0xa16   :  { %1789 = vsyncpa [#allocation4 + $0x1], 1 }

</bundles_post_ra>
